<compile_context>
chip_gen: v7x
topology: tpu7x:2x2x1
jax: 0.10.0
libtpu: 0.0.40
codegen_flags: <defaults>
</compile_context>

<pallas_src>
import jax
import jax.numpy as jnp
from jax import lax
from jax.experimental import pallas as pl
from jax.experimental.pallas import tpu as pltpu

# ----------------------------- configuration ------------------------------
D_MODEL    = 32          # hidden size
N_HEAD     = 4           # attention heads
HEAD_DIM   = D_MODEL // N_HEAD
DIM_FF     = 64          # feed-forward width
SEQ        = 8           # sequence length
BATCH      = 2           # batch size
NUM_LAYERS = 2           # encoder depth (weights shared, as in the module)
EPS        = 1e-5        # LayerNorm eps (PyTorch default)
LANES      = 128         # slab lane width (one vreg row)

# Row offsets of each parameter inside the single packed (SLAB_ROWS, 128) slab.
ROW_WQKV  = 0                       # (32, 96)  [scaled-Q | K | V], x @ W layout
ROW_WO    = ROW_WQKV + D_MODEL      # (32, 32)
ROW_W1    = ROW_WO + D_MODEL        # (32, 64)
ROW_W2    = ROW_W1 + D_MODEL        # (64, 32)
ROW_VEC   = ROW_W2 + DIM_FF         # 8 rows: bqkv, bo, b1, b2, g1, be1, g2, be2
SLAB_ROWS = ROW_VEC + 8             # 168 rows (multiple of 8 sublanes)

# Set to jax.lax.Precision.HIGHEST if bit-tight fp32 parity with the PyTorch
# reference is required (trivial cost at these shapes).  Default MXU precision
# otherwise.
MATMUL_PRECISION = None


def _layer_norm(x, gamma, beta):
    mean = jnp.mean(x, axis=-1, keepdims=True)
    var = jnp.mean((x - mean) ** 2, axis=-1, keepdims=True)
    return (x - mean) * lax.rsqrt(var + EPS) * gamma + beta


def _mm(a, b):
    return jnp.dot(a, b, preferred_element_type=jnp.float32,
                   precision=MATMUL_PRECISION)


def encoder_kernel(x_ref, w_ref, o_ref):
    """Whole TransformerEncoder forward (all layers, all tokens) in one call.

    x_ref holds the (S*B, D) token slab: row t corresponds to (seq s, batch b)
    with t = s*BATCH + b (the contiguous flattening of the PyTorch (S, B, D)
    layout).  w_ref is the single packed parameter slab; all weights were
    pre-transposed / pre-scaled on the host so every matmul is plain x @ W.
    The two encoder layers share weights, so the layer loop reuses the slices
    taken once below.
    """
    T = x_ref.shape[0]
    x = x_ref[...]                                        # (T, D) fp32

    # ---- unpack the single weight slab (static slices, one DMA) -----------
    wqkv = w_ref[ROW_WQKV:ROW_WQKV + D_MODEL, :]          # (32, 128) lanes 0:96 live
    wo   = w_ref[ROW_WO:ROW_WO + D_MODEL, :]              # (32, 128) lanes 0:32 live
    w1   = w_ref[ROW_W1:ROW_W1 + D_MODEL, :]              # (32, 128) lanes 0:64 live
    w2   = w_ref[ROW_W2:ROW_W2 + DIM_FF, :]               # (64, 128) lanes 0:32 live
    vecs = w_ref[ROW_VEC:ROW_VEC + 8, :]                  # (8, 128)  one vreg
    bqkv = vecs[0:1, :]                                   # (1, 128)
    bo   = vecs[1:2, :]
    b1   = vecs[2:3, :]
    b2   = vecs[3:4, :]
    g1   = vecs[4:5, :D_MODEL]                            # (1, 32)
    be1  = vecs[5:6, :D_MODEL]
    g2   = vecs[6:7, :D_MODEL]
    be2  = vecs[7:8, :D_MODEL]

    # Tokens of different batch elements must not attend to each other.
    # Batch id of row t is (t % BATCH).  Built once, reused by every head/layer.
    row = lax.broadcasted_iota(jnp.int32, (T, T), 0)
    col = lax.broadcasted_iota(jnp.int32, (T, T), 1)
    same_batch = (row % BATCH) == (col % BATCH)
    neg_big = jnp.float32(-1e30)

    for _ in range(NUM_LAYERS):                 # shared weights per layer
        # ---- fused QKV projection (one contraction-32, 96-lane output) ----
        # 1/sqrt(HEAD_DIM) is pre-folded into the Q columns and bias.
        qkv = _mm(x, wqkv) + bqkv                          # (T, 128)

        # ---- per-head attention, contexts placed at their lane offsets ----
        ctx_parts = []
        for h in range(N_HEAD):                            # static unroll
            qs = qkv[:, h * HEAD_DIM:(h + 1) * HEAD_DIM]
            ks = qkv[:, D_MODEL + h * HEAD_DIM:D_MODEL + (h + 1) * HEAD_DIM]
            vs = qkv[:, 2 * D_MODEL + h * HEAD_DIM:2 * D_MODEL + (h + 1) * HEAD_DIM]
            s = lax.dot_general(qs, ks,
                                dimension_numbers=(((1,), (1,)), ((), ())),
                                preferred_element_type=jnp.float32,
                                precision=MATMUL_PRECISION)       # (T, T)
            s = jnp.where(same_batch, s, neg_big)
            s = s - jnp.max(s, axis=-1, keepdims=True)
            p = jnp.exp(s)
            # approx reciprocal ~1e-3 rel error; use an exact divide instead
            # if tight parity with the PyTorch softmax is needed.
            p = p * pl.reciprocal(jnp.sum(p, axis=-1, keepdims=True),
                                  approx=True)
            ctx_parts.append(_mm(p, vs))                          # (T, 8)
        ctx = jnp.concatenate(ctx_parts, axis=1)                  # (T, 32)

        # ---- single contraction-32 output projection -----------------------
        attn = (_mm(ctx, wo) + bo)[:, :D_MODEL]

        # ---- add & norm 1 ---------------------------------------------------
        y = _layer_norm(x + attn, g1, be1)

        # ---- feed forward (Linear -> ReLU -> Linear) ------------------------
        h1 = jnp.maximum((_mm(y, w1) + b1)[:, :DIM_FF], 0.0)
        ff = (_mm(h1, w2) + b2)[:, :D_MODEL]

        # ---- add & norm 2 ---------------------------------------------------
        x = _layer_norm(y + ff, g2, be2)

    # TODO(synk): output is a (T, 32) slab -> 32-lane masked stores; a
    # lane-dense relayout would cost more than the couple of vst.msk it saves
    # at this size (per review, keep as-is).
    o_ref[...] = x


def _run_encoder(tokens, weight_slab):
    vmem = pl.BlockSpec(memory_space=pltpu.MemorySpace.VMEM)
    call = pl.pallas_call(
        encoder_kernel,
        out_shape=jax.ShapeDtypeStruct(tokens.shape, jnp.float32),
        in_specs=[vmem, vmem],
        out_specs=vmem,
    )
    return call(tokens, weight_slab)


@jax.jit
def transformer_encoder(src, weight_slab):
    """src: (S, B, D) — PyTorch nn.TransformerEncoder default layout."""
    S, B, D = src.shape
    tokens = src.reshape(S * B, D)          # contiguous flatten, no transpose
    out = _run_encoder(tokens, weight_slab)
    return out.reshape(S, B, D)


# ------------------------- parameter construction -------------------------
def init_torch_params(key):
    """Parameters in the native PyTorch TransformerEncoderLayer layout."""
    ks = jax.random.split(key, 6)

    def w(k, shape, fan_in):
        bound = 1.0 / (fan_in ** 0.5)
        return jax.random.uniform(k, shape, jnp.float32, -bound, bound)

    return dict(
        in_proj_weight=w(ks[0], (3 * D_MODEL, D_MODEL), D_MODEL),
        in_proj_bias=jnp.zeros((3 * D_MODEL,), jnp.float32),
        out_proj_weight=w(ks[1], (D_MODEL, D_MODEL), D_MODEL),
        out_proj_bias=jnp.zeros((D_MODEL,), jnp.float32),
        linear1_weight=w(ks[2], (DIM_FF, D_MODEL), D_MODEL),
        linear1_bias=w(ks[3], (DIM_FF,), D_MODEL),
        linear2_weight=w(ks[4], (D_MODEL, FF := DIM_FF), FF),
        linear2_bias=w(ks[5], (D_MODEL,), DIM_FF),
        norm1_weight=jnp.ones((D_MODEL,), jnp.float32),
        norm1_bias=jnp.zeros((D_MODEL,), jnp.float32),
        norm2_weight=jnp.ones((D_MODEL,), jnp.float32),
        norm2_bias=jnp.zeros((D_MODEL,), jnp.float32),
    )


def prepare_params(p):
    """Host-side one-time re-layout into ONE (SLAB_ROWS, 128) fp32 slab:
      * split+re-fuse the packed QKV projection into a single (D, 3D) weight
        in x @ W orientation, with 1/sqrt(HEAD_DIM) folded into the Q part,
      * pre-transpose every other weight,
      * lane-pad everything to 128 and stack along rows so the kernel needs
        only static ref slices (and the whole parameter set moves in one DMA).
    """
    scale = jnp.float32(1.0 / (HEAD_DIM ** 0.5))
    wq = p["in_proj_weight"][:D_MODEL].T * scale            # (D, D), scale folded
    wk = p["in_proj_weight"][D_MODEL:2 * D_MODEL].T
    wv = p["in_proj_weight"][2 * D_MODEL:].T
    wqkv = jnp.concatenate([wq, wk, wv], axis=1)             # (D, 3D)
    bq = p["in_proj_bias"][:D_MODEL] * scale
    bk = p["in_proj_bias"][D_MODEL:2 * D_MODEL]
    bv = p["in_proj_bias"][2 * D_MODEL:]
    bqkv = jnp.concatenate([bq, bk, bv])                     # (3D,)

    def pad_mat(m):
        return jnp.pad(m, ((0, 0), (0, LANES - m.shape[1])))

    def pad_vec(v):
        return jnp.pad(v, (0, LANES - v.shape[0]))[None, :]

    slab = jnp.concatenate([
        pad_mat(wqkv),                       # rows   0: 32
        pad_mat(p["out_proj_weight"].T),     # rows  32: 64
        pad_mat(p["linear1_weight"].T),      # rows  64: 96
        pad_mat(p["linear2_weight"].T),      # rows  96:160
        pad_vec(bqkv),                       # row  160
        pad_vec(p["out_proj_bias"]),         # row  161
        pad_vec(p["linear1_bias"]),          # row  162
        pad_vec(p["linear2_bias"]),          # row  163
        pad_vec(p["norm1_weight"]),          # row  164
        pad_vec(p["norm1_bias"]),            # row  165
        pad_vec(p["norm2_weight"]),          # row  166
        pad_vec(p["norm2_bias"]),            # row  167
    ], axis=0).astype(jnp.float32)
    assert slab.shape == (SLAB_ROWS, LANES)
    return slab


if __name__ == "__main__":
    key = jax.random.PRNGKey(0)
    k_src, k_par = jax.random.split(key)
    src = jax.random.normal(k_src, (SEQ, BATCH, D_MODEL), jnp.float32)
    weight_slab = prepare_params(init_torch_params(k_par))

    out = transformer_encoder(src, weight_slab)
    out = jax.block_until_ready(out)
    assert out.shape == (SEQ, BATCH, D_MODEL)
    assert bool(jnp.all(jnp.isfinite(out)))
    print("KERNEL_OK")
</pallas_src>

<mosaic_0001>
module attributes {stable_mosaic.version = 11 : i64} {
  func.func @encoder_kernel(%arg0: memref<16x32xf32, #tpu.memory_space<vmem>>, %arg1: memref<168x128xf32, #tpu.memory_space<vmem>>, %arg2: memref<16x32xf32, #tpu.memory_space<vmem>>) attributes {dimension_semantics = [], scalar_prefetch = 0 : i64, scratch_operands = 0 : i64, tpu.core_type = #tpu.core_type<tc>} {
    %c0 = arith.constant 0 : index
    %c0_0 = arith.constant 0 : index
    %0 = vector.load %arg0[%c0, %c0_0] : memref<16x32xf32, #tpu.memory_space<vmem>>, vector<16x32xf32>
    %c0_1 = arith.constant 0 : index
    %c0_2 = arith.constant 0 : index
    %1 = vector.load %arg1[%c0_1, %c0_2] : memref<168x128xf32, #tpu.memory_space<vmem>>, vector<32x128xf32>
    %c32 = arith.constant 32 : index
    %c0_3 = arith.constant 0 : index
    %2 = vector.load %arg1[%c32, %c0_3] : memref<168x128xf32, #tpu.memory_space<vmem>>, vector<32x128xf32>
    %c64 = arith.constant 64 : index
    %c0_4 = arith.constant 0 : index
    %3 = vector.load %arg1[%c64, %c0_4] : memref<168x128xf32, #tpu.memory_space<vmem>>, vector<32x128xf32>
    %c96 = arith.constant 96 : index
    %c0_5 = arith.constant 0 : index
    %4 = vector.load %arg1[%c96, %c0_5] : memref<168x128xf32, #tpu.memory_space<vmem>>, vector<64x128xf32>
    %c160 = arith.constant 160 : index
    %c0_6 = arith.constant 0 : index
    %5 = vector.load %arg1[%c160, %c0_6] : memref<168x128xf32, #tpu.memory_space<vmem>>, vector<8x128xf32>
    %6 = vector.extract_strided_slice %5 {offsets = [0, 0], sizes = [1, 128], strides = [1, 1]} : vector<8x128xf32> to vector<1x128xf32>
    %7 = vector.extract_strided_slice %5 {offsets = [1, 0], sizes = [1, 128], strides = [1, 1]} : vector<8x128xf32> to vector<1x128xf32>
    %8 = vector.extract_strided_slice %5 {offsets = [2, 0], sizes = [1, 128], strides = [1, 1]} : vector<8x128xf32> to vector<1x128xf32>
    %9 = vector.extract_strided_slice %5 {offsets = [3, 0], sizes = [1, 128], strides = [1, 1]} : vector<8x128xf32> to vector<1x128xf32>
    %10 = vector.extract_strided_slice %5 {offsets = [4, 0], sizes = [1, 32], strides = [1, 1]} : vector<8x128xf32> to vector<1x32xf32>
    %11 = vector.extract_strided_slice %5 {offsets = [5, 0], sizes = [1, 32], strides = [1, 1]} : vector<8x128xf32> to vector<1x32xf32>
    %12 = vector.extract_strided_slice %5 {offsets = [6, 0], sizes = [1, 32], strides = [1, 1]} : vector<8x128xf32> to vector<1x32xf32>
    %13 = vector.extract_strided_slice %5 {offsets = [7, 0], sizes = [1, 32], strides = [1, 1]} : vector<8x128xf32> to vector<1x32xf32>
    %14 = tpu.iota {dimensions = array<i32: 0>} : vector<16x16xi32>
    %15 = tpu.iota {dimensions = array<i32: 1>} : vector<16x16xi32>
    %c2_i32 = arith.constant 2 : i32
    %c0_i32 = arith.constant 0 : i32
    %16 = arith.cmpi eq, %c2_i32, %c0_i32 : i32
    %c1_i32 = arith.constant 1 : i32
    %17 = arith.select %16, %c1_i32, %c2_i32 : i32
    %18 = vector.broadcast %17 : i32 to vector<16x16xi32>
    %19 = arith.remsi %14, %18 : vector<16x16xi32>
    %c0_i32_7 = arith.constant 0 : i32
    %20 = vector.broadcast %c0_i32_7 : i32 to vector<16x16xi32>
    %21 = arith.cmpi ne, %19, %20 : vector<16x16xi32>
    %c0_i32_8 = arith.constant 0 : i32
    %22 = vector.broadcast %c0_i32_8 : i32 to vector<16x16xi32>
    %23 = arith.cmpi slt, %19, %22 : vector<16x16xi32>
    %c0_i32_9 = arith.constant 0 : i32
    %24 = arith.cmpi slt, %17, %c0_i32_9 : i32
    %25 = vector.broadcast %24 : i1 to vector<16x16xi1>
    %26 = vector.broadcast %25 : vector<16x16xi1> to vector<16x16xi1>
    %27 = arith.xori %23, %26 : vector<16x16xi1>
    %28 = arith.andi %27, %21 : vector<16x16xi1>
    %29 = vector.broadcast %17 : i32 to vector<16x16xi32>
    %30 = arith.addi %19, %29 : vector<16x16xi32>
    %31 = arith.select %28, %30, %19 : vector<16x16xi1>, vector<16x16xi32>
    %c2_i32_10 = arith.constant 2 : i32
    %c0_i32_11 = arith.constant 0 : i32
    %32 = arith.cmpi eq, %c2_i32_10, %c0_i32_11 : i32
    %c1_i32_12 = arith.constant 1 : i32
    %33 = arith.select %32, %c1_i32_12, %c2_i32_10 : i32
    %34 = vector.broadcast %33 : i32 to vector<16x16xi32>
    %35 = arith.remsi %15, %34 : vector<16x16xi32>
    %c0_i32_13 = arith.constant 0 : i32
    %36 = vector.broadcast %c0_i32_13 : i32 to vector<16x16xi32>
    %37 = arith.cmpi ne, %35, %36 : vector<16x16xi32>
    %c0_i32_14 = arith.constant 0 : i32
    %38 = vector.broadcast %c0_i32_14 : i32 to vector<16x16xi32>
    %39 = arith.cmpi slt, %35, %38 : vector<16x16xi32>
    %c0_i32_15 = arith.constant 0 : i32
    %40 = arith.cmpi slt, %33, %c0_i32_15 : i32
    %41 = vector.broadcast %40 : i1 to vector<16x16xi1>
    %42 = vector.broadcast %41 : vector<16x16xi1> to vector<16x16xi1>
    %43 = arith.xori %39, %42 : vector<16x16xi1>
    %44 = arith.andi %43, %37 : vector<16x16xi1>
    %45 = vector.broadcast %33 : i32 to vector<16x16xi32>
    %46 = arith.addi %35, %45 : vector<16x16xi32>
    %47 = arith.select %44, %46, %35 : vector<16x16xi1>, vector<16x16xi32>
    %48 = arith.cmpi eq, %31, %47 : vector<16x16xi32>
    %cst = arith.constant dense<0.000000e+00> : vector<16x128xf32>
    %49 = tpu.matmul %0, %1, %cst {dimension_numbers = #tpu.dot_dimension_numbers<[1], [0], [0], [1], [0, 0, 1, 1], [], []>} : vector<16x32xf32>, vector<32x128xf32>, vector<16x128xf32> -> vector<16x128xf32>
    %50 = vector.broadcast %6 : vector<1x128xf32> to vector<16x128xf32>
    %51 = arith.addf %49, %50 : vector<16x128xf32>
    %52 = vector.extract_strided_slice %51 {offsets = [0, 0], sizes = [16, 8], strides = [1, 1]} : vector<16x128xf32> to vector<16x8xf32>
    %53 = vector.extract_strided_slice %51 {offsets = [0, 32], sizes = [16, 8], strides = [1, 1]} : vector<16x128xf32> to vector<16x8xf32>
    %54 = vector.extract_strided_slice %51 {offsets = [0, 64], sizes = [16, 8], strides = [1, 1]} : vector<16x128xf32> to vector<16x8xf32>
    %cst_16 = arith.constant dense<0.000000e+00> : vector<16x16xf32>
    %55 = tpu.matmul %52, %53, %cst_16 {dimension_numbers = #tpu.dot_dimension_numbers<[1], [1], [0], [0], [0, 0, 1, 0], [], []>} : vector<16x8xf32>, vector<16x8xf32>, vector<16x16xf32> -> vector<16x16xf32>
    %cst_17 = arith.constant -1.000000e+30 : f32
    %56 = vector.broadcast %cst_17 : f32 to vector<16x16xf32>
    %57 = arith.select %48, %55, %56 : vector<16x16xi1>, vector<16x16xf32>
    %cst_18 = arith.constant dense<0xFF800000> : vector<16xf32>
    %58 = vector.multi_reduction <maximumf>, %57, %cst_18 [1] : vector<16x16xf32> to vector<16xf32>
    %59 = vector.shape_cast %58 : vector<16xf32> to vector<16x1xf32>
    %60 = vector.broadcast %59 : vector<16x1xf32> to vector<16x16xf32>
    %61 = arith.subf %57, %60 : vector<16x16xf32>
    %62 = math.exp %61 : vector<16x16xf32>
    %cst_19 = arith.constant dense<0.000000e+00> : vector<16xf32>
    %63 = vector.multi_reduction <add>, %62, %cst_19 [1] : vector<16x16xf32> to vector<16xf32>
    %64 = vector.shape_cast %63 : vector<16xf32> to vector<16x1xf32>
    %65 = tpu.reciprocal %64 {approx = true} : vector<16x1xf32> -> vector<16x1xf32>
    %66 = vector.broadcast %65 : vector<16x1xf32> to vector<16x16xf32>
    %67 = arith.mulf %62, %66 : vector<16x16xf32>
    %cst_20 = arith.constant dense<0.000000e+00> : vector<16x8xf32>
    %68 = tpu.matmul %67, %54, %cst_20 {dimension_numbers = #tpu.dot_dimension_numbers<[1], [0], [0], [1], [0, 0, 1, 1], [], []>} : vector<16x16xf32>, vector<16x8xf32>, vector<16x8xf32> -> vector<16x8xf32>
    %69 = vector.extract_strided_slice %51 {offsets = [0, 8], sizes = [16, 8], strides = [1, 1]} : vector<16x128xf32> to vector<16x8xf32>
    %70 = vector.extract_strided_slice %51 {offsets = [0, 40], sizes = [16, 8], strides = [1, 1]} : vector<16x128xf32> to vector<16x8xf32>
    %71 = vector.extract_strided_slice %51 {offsets = [0, 72], sizes = [16, 8], strides = [1, 1]} : vector<16x128xf32> to vector<16x8xf32>
    %cst_21 = arith.constant dense<0.000000e+00> : vector<16x16xf32>
    %72 = tpu.matmul %69, %70, %cst_21 {dimension_numbers = #tpu.dot_dimension_numbers<[1], [1], [0], [0], [0, 0, 1, 0], [], []>} : vector<16x8xf32>, vector<16x8xf32>, vector<16x16xf32> -> vector<16x16xf32>
    %cst_22 = arith.constant -1.000000e+30 : f32
    %73 = vector.broadcast %cst_22 : f32 to vector<16x16xf32>
    %74 = arith.select %48, %72, %73 : vector<16x16xi1>, vector<16x16xf32>
    %cst_23 = arith.constant dense<0xFF800000> : vector<16xf32>
    %75 = vector.multi_reduction <maximumf>, %74, %cst_23 [1] : vector<16x16xf32> to vector<16xf32>
    %76 = vector.shape_cast %75 : vector<16xf32> to vector<16x1xf32>
    %77 = vector.broadcast %76 : vector<16x1xf32> to vector<16x16xf32>
    %78 = arith.subf %74, %77 : vector<16x16xf32>
    %79 = math.exp %78 : vector<16x16xf32>
    %cst_24 = arith.constant dense<0.000000e+00> : vector<16xf32>
    %80 = vector.multi_reduction <add>, %79, %cst_24 [1] : vector<16x16xf32> to vector<16xf32>
    %81 = vector.shape_cast %80 : vector<16xf32> to vector<16x1xf32>
    %82 = tpu.reciprocal %81 {approx = true} : vector<16x1xf32> -> vector<16x1xf32>
    %83 = vector.broadcast %82 : vector<16x1xf32> to vector<16x16xf32>
    %84 = arith.mulf %79, %83 : vector<16x16xf32>
    %cst_25 = arith.constant dense<0.000000e+00> : vector<16x8xf32>
    %85 = tpu.matmul %84, %71, %cst_25 {dimension_numbers = #tpu.dot_dimension_numbers<[1], [0], [0], [1], [0, 0, 1, 1], [], []>} : vector<16x16xf32>, vector<16x8xf32>, vector<16x8xf32> -> vector<16x8xf32>
    %86 = vector.extract_strided_slice %51 {offsets = [0, 16], sizes = [16, 8], strides = [1, 1]} : vector<16x128xf32> to vector<16x8xf32>
    %87 = vector.extract_strided_slice %51 {offsets = [0, 48], sizes = [16, 8], strides = [1, 1]} : vector<16x128xf32> to vector<16x8xf32>
    %88 = vector.extract_strided_slice %51 {offsets = [0, 80], sizes = [16, 8], strides = [1, 1]} : vector<16x128xf32> to vector<16x8xf32>
    %cst_26 = arith.constant dense<0.000000e+00> : vector<16x16xf32>
    %89 = tpu.matmul %86, %87, %cst_26 {dimension_numbers = #tpu.dot_dimension_numbers<[1], [1], [0], [0], [0, 0, 1, 0], [], []>} : vector<16x8xf32>, vector<16x8xf32>, vector<16x16xf32> -> vector<16x16xf32>
    %cst_27 = arith.constant -1.000000e+30 : f32
    %90 = vector.broadcast %cst_27 : f32 to vector<16x16xf32>
    %91 = arith.select %48, %89, %90 : vector<16x16xi1>, vector<16x16xf32>
    %cst_28 = arith.constant dense<0xFF800000> : vector<16xf32>
    %92 = vector.multi_reduction <maximumf>, %91, %cst_28 [1] : vector<16x16xf32> to vector<16xf32>
    %93 = vector.shape_cast %92 : vector<16xf32> to vector<16x1xf32>
    %94 = vector.broadcast %93 : vector<16x1xf32> to vector<16x16xf32>
    %95 = arith.subf %91, %94 : vector<16x16xf32>
    %96 = math.exp %95 : vector<16x16xf32>
    %cst_29 = arith.constant dense<0.000000e+00> : vector<16xf32>
    %97 = vector.multi_reduction <add>, %96, %cst_29 [1] : vector<16x16xf32> to vector<16xf32>
    %98 = vector.shape_cast %97 : vector<16xf32> to vector<16x1xf32>
    %99 = tpu.reciprocal %98 {approx = true} : vector<16x1xf32> -> vector<16x1xf32>
    %100 = vector.broadcast %99 : vector<16x1xf32> to vector<16x16xf32>
    %101 = arith.mulf %96, %100 : vector<16x16xf32>
    %cst_30 = arith.constant dense<0.000000e+00> : vector<16x8xf32>
    %102 = tpu.matmul %101, %88, %cst_30 {dimension_numbers = #tpu.dot_dimension_numbers<[1], [0], [0], [1], [0, 0, 1, 1], [], []>} : vector<16x16xf32>, vector<16x8xf32>, vector<16x8xf32> -> vector<16x8xf32>
    %103 = vector.extract_strided_slice %51 {offsets = [0, 24], sizes = [16, 8], strides = [1, 1]} : vector<16x128xf32> to vector<16x8xf32>
    %104 = vector.extract_strided_slice %51 {offsets = [0, 56], sizes = [16, 8], strides = [1, 1]} : vector<16x128xf32> to vector<16x8xf32>
    %105 = vector.extract_strided_slice %51 {offsets = [0, 88], sizes = [16, 8], strides = [1, 1]} : vector<16x128xf32> to vector<16x8xf32>
    %cst_31 = arith.constant dense<0.000000e+00> : vector<16x16xf32>
    %106 = tpu.matmul %103, %104, %cst_31 {dimension_numbers = #tpu.dot_dimension_numbers<[1], [1], [0], [0], [0, 0, 1, 0], [], []>} : vector<16x8xf32>, vector<16x8xf32>, vector<16x16xf32> -> vector<16x16xf32>
    %cst_32 = arith.constant -1.000000e+30 : f32
    %107 = vector.broadcast %cst_32 : f32 to vector<16x16xf32>
    %108 = arith.select %48, %106, %107 : vector<16x16xi1>, vector<16x16xf32>
    %cst_33 = arith.constant dense<0xFF800000> : vector<16xf32>
    %109 = vector.multi_reduction <maximumf>, %108, %cst_33 [1] : vector<16x16xf32> to vector<16xf32>
    %110 = vector.shape_cast %109 : vector<16xf32> to vector<16x1xf32>
    %111 = vector.broadcast %110 : vector<16x1xf32> to vector<16x16xf32>
    %112 = arith.subf %108, %111 : vector<16x16xf32>
    %113 = math.exp %112 : vector<16x16xf32>
    %cst_34 = arith.constant dense<0.000000e+00> : vector<16xf32>
    %114 = vector.multi_reduction <add>, %113, %cst_34 [1] : vector<16x16xf32> to vector<16xf32>
    %115 = vector.shape_cast %114 : vector<16xf32> to vector<16x1xf32>
    %116 = tpu.reciprocal %115 {approx = true} : vector<16x1xf32> -> vector<16x1xf32>
    %117 = vector.broadcast %116 : vector<16x1xf32> to vector<16x16xf32>
    %118 = arith.mulf %113, %117 : vector<16x16xf32>
    %cst_35 = arith.constant dense<0.000000e+00> : vector<16x8xf32>
    %119 = tpu.matmul %118, %105, %cst_35 {dimension_numbers = #tpu.dot_dimension_numbers<[1], [0], [0], [1], [0, 0, 1, 1], [], []>} : vector<16x16xf32>, vector<16x8xf32>, vector<16x8xf32> -> vector<16x8xf32>
    %120 = tpu.concatenate %68, %85, %102, %119 in 1 : vector<16x8xf32>, vector<16x8xf32>, vector<16x8xf32>, vector<16x8xf32> -> vector<16x32xf32>
    %cst_36 = arith.constant dense<0.000000e+00> : vector<16x128xf32>
    %121 = tpu.matmul %120, %2, %cst_36 {dimension_numbers = #tpu.dot_dimension_numbers<[1], [0], [0], [1], [0, 0, 1, 1], [], []>} : vector<16x32xf32>, vector<32x128xf32>, vector<16x128xf32> -> vector<16x128xf32>
    %122 = vector.broadcast %7 : vector<1x128xf32> to vector<16x128xf32>
    %123 = arith.addf %121, %122 : vector<16x128xf32>
    %124 = vector.extract_strided_slice %123 {offsets = [0, 0], sizes = [16, 32], strides = [1, 1]} : vector<16x128xf32> to vector<16x32xf32>
    %125 = arith.addf %0, %124 : vector<16x32xf32>
    %cst_37 = arith.constant dense<0.000000e+00> : vector<16xf32>
    %126 = vector.multi_reduction <add>, %125, %cst_37 [1] : vector<16x32xf32> to vector<16xf32>
    %127 = vector.shape_cast %126 : vector<16xf32> to vector<16x1xf32>
    %cst_38 = arith.constant 3.200000e+01 : f32
    %128 = vector.broadcast %cst_38 : f32 to vector<16x1xf32>
    %129 = arith.divf %127, %128 : vector<16x1xf32>
    %130 = vector.broadcast %129 : vector<16x1xf32> to vector<16x32xf32>
    %131 = arith.subf %125, %130 : vector<16x32xf32>
    %132 = arith.mulf %131, %131 : vector<16x32xf32>
    %cst_39 = arith.constant dense<0.000000e+00> : vector<16xf32>
    %133 = vector.multi_reduction <add>, %132, %cst_39 [1] : vector<16x32xf32> to vector<16xf32>
    %134 = vector.shape_cast %133 : vector<16xf32> to vector<16x1xf32>
    %cst_40 = arith.constant 3.200000e+01 : f32
    %135 = vector.broadcast %cst_40 : f32 to vector<16x1xf32>
    %136 = arith.divf %134, %135 : vector<16x1xf32>
    %137 = vector.broadcast %129 : vector<16x1xf32> to vector<16x32xf32>
    %138 = arith.subf %125, %137 : vector<16x32xf32>
    %cst_41 = arith.constant 9.99999974E-6 : f32
    %139 = vector.broadcast %cst_41 : f32 to vector<16x1xf32>
    %140 = arith.addf %136, %139 : vector<16x1xf32>
    %141 = math.rsqrt %140 : vector<16x1xf32>
    %142 = vector.broadcast %141 : vector<16x1xf32> to vector<16x32xf32>
    %143 = arith.mulf %138, %142 : vector<16x32xf32>
    %144 = vector.broadcast %10 : vector<1x32xf32> to vector<16x32xf32>
    %145 = arith.mulf %143, %144 : vector<16x32xf32>
    %146 = vector.broadcast %11 : vector<1x32xf32> to vector<16x32xf32>
    %147 = arith.addf %145, %146 : vector<16x32xf32>
    %cst_42 = arith.constant dense<0.000000e+00> : vector<16x128xf32>
    %148 = tpu.matmul %147, %3, %cst_42 {dimension_numbers = #tpu.dot_dimension_numbers<[1], [0], [0], [1], [0, 0, 1, 1], [], []>} : vector<16x32xf32>, vector<32x128xf32>, vector<16x128xf32> -> vector<16x128xf32>
    %149 = vector.broadcast %8 : vector<1x128xf32> to vector<16x128xf32>
    %150 = arith.addf %148, %149 : vector<16x128xf32>
    %151 = vector.extract_strided_slice %150 {offsets = [0, 0], sizes = [16, 64], strides = [1, 1]} : vector<16x128xf32> to vector<16x64xf32>
    %cst_43 = arith.constant 0.000000e+00 : f32
    %152 = vector.broadcast %cst_43 : f32 to vector<16x64xf32>
    %153 = arith.maximumf %151, %152 : vector<16x64xf32>
    %cst_44 = arith.constant dense<0.000000e+00> : vector<16x128xf32>
    %154 = tpu.matmul %153, %4, %cst_44 {dimension_numbers = #tpu.dot_dimension_numbers<[1], [0], [0], [1], [0, 0, 1, 1], [], []>} : vector<16x64xf32>, vector<64x128xf32>, vector<16x128xf32> -> vector<16x128xf32>
    %155 = vector.broadcast %9 : vector<1x128xf32> to vector<16x128xf32>
    %156 = arith.addf %154, %155 : vector<16x128xf32>
    %157 = vector.extract_strided_slice %156 {offsets = [0, 0], sizes = [16, 32], strides = [1, 1]} : vector<16x128xf32> to vector<16x32xf32>
    %158 = arith.addf %147, %157 : vector<16x32xf32>
    %cst_45 = arith.constant dense<0.000000e+00> : vector<16xf32>
    %159 = vector.multi_reduction <add>, %158, %cst_45 [1] : vector<16x32xf32> to vector<16xf32>
    %160 = vector.shape_cast %159 : vector<16xf32> to vector<16x1xf32>
    %cst_46 = arith.constant 3.200000e+01 : f32
    %161 = vector.broadcast %cst_46 : f32 to vector<16x1xf32>
    %162 = arith.divf %160, %161 : vector<16x1xf32>
    %163 = vector.broadcast %162 : vector<16x1xf32> to vector<16x32xf32>
    %164 = arith.subf %158, %163 : vector<16x32xf32>
    %165 = arith.mulf %164, %164 : vector<16x32xf32>
    %cst_47 = arith.constant dense<0.000000e+00> : vector<16xf32>
    %166 = vector.multi_reduction <add>, %165, %cst_47 [1] : vector<16x32xf32> to vector<16xf32>
    %167 = vector.shape_cast %166 : vector<16xf32> to vector<16x1xf32>
    %cst_48 = arith.constant 3.200000e+01 : f32
    %168 = vector.broadcast %cst_48 : f32 to vector<16x1xf32>
    %169 = arith.divf %167, %168 : vector<16x1xf32>
    %170 = vector.broadcast %162 : vector<16x1xf32> to vector<16x32xf32>
    %171 = arith.subf %158, %170 : vector<16x32xf32>
    %cst_49 = arith.constant 9.99999974E-6 : f32
    %172 = vector.broadcast %cst_49 : f32 to vector<16x1xf32>
    %173 = arith.addf %169, %172 : vector<16x1xf32>
    %174 = math.rsqrt %173 : vector<16x1xf32>
    %175 = vector.broadcast %174 : vector<16x1xf32> to vector<16x32xf32>
    %176 = arith.mulf %171, %175 : vector<16x32xf32>
    %177 = vector.broadcast %12 : vector<1x32xf32> to vector<16x32xf32>
    %178 = arith.mulf %176, %177 : vector<16x32xf32>
    %179 = vector.broadcast %13 : vector<1x32xf32> to vector<16x32xf32>
    %180 = arith.addf %178, %179 : vector<16x32xf32>
    %cst_50 = arith.constant dense<0.000000e+00> : vector<16x128xf32>
    %181 = tpu.matmul %180, %1, %cst_50 {dimension_numbers = #tpu.dot_dimension_numbers<[1], [0], [0], [1], [0, 0, 1, 1], [], []>} : vector<16x32xf32>, vector<32x128xf32>, vector<16x128xf32> -> vector<16x128xf32>
    %182 = vector.broadcast %6 : vector<1x128xf32> to vector<16x128xf32>
    %183 = arith.addf %181, %182 : vector<16x128xf32>
    %184 = vector.extract_strided_slice %183 {offsets = [0, 0], sizes = [16, 8], strides = [1, 1]} : vector<16x128xf32> to vector<16x8xf32>
    %185 = vector.extract_strided_slice %183 {offsets = [0, 32], sizes = [16, 8], strides = [1, 1]} : vector<16x128xf32> to vector<16x8xf32>
    %186 = vector.extract_strided_slice %183 {offsets = [0, 64], sizes = [16, 8], strides = [1, 1]} : vector<16x128xf32> to vector<16x8xf32>
    %cst_51 = arith.constant dense<0.000000e+00> : vector<16x16xf32>
    %187 = tpu.matmul %184, %185, %cst_51 {dimension_numbers = #tpu.dot_dimension_numbers<[1], [1], [0], [0], [0, 0, 1, 0], [], []>} : vector<16x8xf32>, vector<16x8xf32>, vector<16x16xf32> -> vector<16x16xf32>
    %cst_52 = arith.constant -1.000000e+30 : f32
    %188 = vector.broadcast %cst_52 : f32 to vector<16x16xf32>
    %189 = arith.select %48, %187, %188 : vector<16x16xi1>, vector<16x16xf32>
    %cst_53 = arith.constant dense<0xFF800000> : vector<16xf32>
    %190 = vector.multi_reduction <maximumf>, %189, %cst_53 [1] : vector<16x16xf32> to vector<16xf32>
    %191 = vector.shape_cast %190 : vector<16xf32> to vector<16x1xf32>
    %192 = vector.broadcast %191 : vector<16x1xf32> to vector<16x16xf32>
    %193 = arith.subf %189, %192 : vector<16x16xf32>
    %194 = math.exp %193 : vector<16x16xf32>
    %cst_54 = arith.constant dense<0.000000e+00> : vector<16xf32>
    %195 = vector.multi_reduction <add>, %194, %cst_54 [1] : vector<16x16xf32> to vector<16xf32>
    %196 = vector.shape_cast %195 : vector<16xf32> to vector<16x1xf32>
    %197 = tpu.reciprocal %196 {approx = true} : vector<16x1xf32> -> vector<16x1xf32>
    %198 = vector.broadcast %197 : vector<16x1xf32> to vector<16x16xf32>
    %199 = arith.mulf %194, %198 : vector<16x16xf32>
    %cst_55 = arith.constant dense<0.000000e+00> : vector<16x8xf32>
    %200 = tpu.matmul %199, %186, %cst_55 {dimension_numbers = #tpu.dot_dimension_numbers<[1], [0], [0], [1], [0, 0, 1, 1], [], []>} : vector<16x16xf32>, vector<16x8xf32>, vector<16x8xf32> -> vector<16x8xf32>
    %201 = vector.extract_strided_slice %183 {offsets = [0, 8], sizes = [16, 8], strides = [1, 1]} : vector<16x128xf32> to vector<16x8xf32>
    %202 = vector.extract_strided_slice %183 {offsets = [0, 40], sizes = [16, 8], strides = [1, 1]} : vector<16x128xf32> to vector<16x8xf32>
    %203 = vector.extract_strided_slice %183 {offsets = [0, 72], sizes = [16, 8], strides = [1, 1]} : vector<16x128xf32> to vector<16x8xf32>
    %cst_56 = arith.constant dense<0.000000e+00> : vector<16x16xf32>
    %204 = tpu.matmul %201, %202, %cst_56 {dimension_numbers = #tpu.dot_dimension_numbers<[1], [1], [0], [0], [0, 0, 1, 0], [], []>} : vector<16x8xf32>, vector<16x8xf32>, vector<16x16xf32> -> vector<16x16xf32>
    %cst_57 = arith.constant -1.000000e+30 : f32
    %205 = vector.broadcast %cst_57 : f32 to vector<16x16xf32>
    %206 = arith.select %48, %204, %205 : vector<16x16xi1>, vector<16x16xf32>
    %cst_58 = arith.constant dense<0xFF800000> : vector<16xf32>
    %207 = vector.multi_reduction <maximumf>, %206, %cst_58 [1] : vector<16x16xf32> to vector<16xf32>
    %208 = vector.shape_cast %207 : vector<16xf32> to vector<16x1xf32>
    %209 = vector.broadcast %208 : vector<16x1xf32> to vector<16x16xf32>
    %210 = arith.subf %206, %209 : vector<16x16xf32>
    %211 = math.exp %210 : vector<16x16xf32>
    %cst_59 = arith.constant dense<0.000000e+00> : vector<16xf32>
    %212 = vector.multi_reduction <add>, %211, %cst_59 [1] : vector<16x16xf32> to vector<16xf32>
    %213 = vector.shape_cast %212 : vector<16xf32> to vector<16x1xf32>
    %214 = tpu.reciprocal %213 {approx = true} : vector<16x1xf32> -> vector<16x1xf32>
    %215 = vector.broadcast %214 : vector<16x1xf32> to vector<16x16xf32>
    %216 = arith.mulf %211, %215 : vector<16x16xf32>
    %cst_60 = arith.constant dense<0.000000e+00> : vector<16x8xf32>
    %217 = tpu.matmul %216, %203, %cst_60 {dimension_numbers = #tpu.dot_dimension_numbers<[1], [0], [0], [1], [0, 0, 1, 1], [], []>} : vector<16x16xf32>, vector<16x8xf32>, vector<16x8xf32> -> vector<16x8xf32>
    %218 = vector.extract_strided_slice %183 {offsets = [0, 16], sizes = [16, 8], strides = [1, 1]} : vector<16x128xf32> to vector<16x8xf32>
    %219 = vector.extract_strided_slice %183 {offsets = [0, 48], sizes = [16, 8], strides = [1, 1]} : vector<16x128xf32> to vector<16x8xf32>
    %220 = vector.extract_strided_slice %183 {offsets = [0, 80], sizes = [16, 8], strides = [1, 1]} : vector<16x128xf32> to vector<16x8xf32>
    %cst_61 = arith.constant dense<0.000000e+00> : vector<16x16xf32>
    %221 = tpu.matmul %218, %219, %cst_61 {dimension_numbers = #tpu.dot_dimension_numbers<[1], [1], [0], [0], [0, 0, 1, 0], [], []>} : vector<16x8xf32>, vector<16x8xf32>, vector<16x16xf32> -> vector<16x16xf32>
    %cst_62 = arith.constant -1.000000e+30 : f32
    %222 = vector.broadcast %cst_62 : f32 to vector<16x16xf32>
    %223 = arith.select %48, %221, %222 : vector<16x16xi1>, vector<16x16xf32>
    %cst_63 = arith.constant dense<0xFF800000> : vector<16xf32>
    %224 = vector.multi_reduction <maximumf>, %223, %cst_63 [1] : vector<16x16xf32> to vector<16xf32>
    %225 = vector.shape_cast %224 : vector<16xf32> to vector<16x1xf32>
    %226 = vector.broadcast %225 : vector<16x1xf32> to vector<16x16xf32>
    %227 = arith.subf %223, %226 : vector<16x16xf32>
    %228 = math.exp %227 : vector<16x16xf32>
    %cst_64 = arith.constant dense<0.000000e+00> : vector<16xf32>
    %229 = vector.multi_reduction <add>, %228, %cst_64 [1] : vector<16x16xf32> to vector<16xf32>
    %230 = vector.shape_cast %229 : vector<16xf32> to vector<16x1xf32>
    %231 = tpu.reciprocal %230 {approx = true} : vector<16x1xf32> -> vector<16x1xf32>
    %232 = vector.broadcast %231 : vector<16x1xf32> to vector<16x16xf32>
    %233 = arith.mulf %228, %232 : vector<16x16xf32>
    %cst_65 = arith.constant dense<0.000000e+00> : vector<16x8xf32>
    %234 = tpu.matmul %233, %220, %cst_65 {dimension_numbers = #tpu.dot_dimension_numbers<[1], [0], [0], [1], [0, 0, 1, 1], [], []>} : vector<16x16xf32>, vector<16x8xf32>, vector<16x8xf32> -> vector<16x8xf32>
    %235 = vector.extract_strided_slice %183 {offsets = [0, 24], sizes = [16, 8], strides = [1, 1]} : vector<16x128xf32> to vector<16x8xf32>
    %236 = vector.extract_strided_slice %183 {offsets = [0, 56], sizes = [16, 8], strides = [1, 1]} : vector<16x128xf32> to vector<16x8xf32>
    %237 = vector.extract_strided_slice %183 {offsets = [0, 88], sizes = [16, 8], strides = [1, 1]} : vector<16x128xf32> to vector<16x8xf32>
    %cst_66 = arith.constant dense<0.000000e+00> : vector<16x16xf32>
    %238 = tpu.matmul %235, %236, %cst_66 {dimension_numbers = #tpu.dot_dimension_numbers<[1], [1], [0], [0], [0, 0, 1, 0], [], []>} : vector<16x8xf32>, vector<16x8xf32>, vector<16x16xf32> -> vector<16x16xf32>
    %cst_67 = arith.constant -1.000000e+30 : f32
    %239 = vector.broadcast %cst_67 : f32 to vector<16x16xf32>
    %240 = arith.select %48, %238, %239 : vector<16x16xi1>, vector<16x16xf32>
    %cst_68 = arith.constant dense<0xFF800000> : vector<16xf32>
    %241 = vector.multi_reduction <maximumf>, %240, %cst_68 [1] : vector<16x16xf32> to vector<16xf32>
    %242 = vector.shape_cast %241 : vector<16xf32> to vector<16x1xf32>
    %243 = vector.broadcast %242 : vector<16x1xf32> to vector<16x16xf32>
    %244 = arith.subf %240, %243 : vector<16x16xf32>
    %245 = math.exp %244 : vector<16x16xf32>
    %cst_69 = arith.constant dense<0.000000e+00> : vector<16xf32>
    %246 = vector.multi_reduction <add>, %245, %cst_69 [1] : vector<16x16xf32> to vector<16xf32>
    %247 = vector.shape_cast %246 : vector<16xf32> to vector<16x1xf32>
    %248 = tpu.reciprocal %247 {approx = true} : vector<16x1xf32> -> vector<16x1xf32>
    %249 = vector.broadcast %248 : vector<16x1xf32> to vector<16x16xf32>
    %250 = arith.mulf %245, %249 : vector<16x16xf32>
    %cst_70 = arith.constant dense<0.000000e+00> : vector<16x8xf32>
    %251 = tpu.matmul %250, %237, %cst_70 {dimension_numbers = #tpu.dot_dimension_numbers<[1], [0], [0], [1], [0, 0, 1, 1], [], []>} : vector<16x16xf32>, vector<16x8xf32>, vector<16x8xf32> -> vector<16x8xf32>
    %252 = tpu.concatenate %200, %217, %234, %251 in 1 : vector<16x8xf32>, vector<16x8xf32>, vector<16x8xf32>, vector<16x8xf32> -> vector<16x32xf32>
    %cst_71 = arith.constant dense<0.000000e+00> : vector<16x128xf32>
    %253 = tpu.matmul %252, %2, %cst_71 {dimension_numbers = #tpu.dot_dimension_numbers<[1], [0], [0], [1], [0, 0, 1, 1], [], []>} : vector<16x32xf32>, vector<32x128xf32>, vector<16x128xf32> -> vector<16x128xf32>
    %254 = vector.broadcast %7 : vector<1x128xf32> to vector<16x128xf32>
    %255 = arith.addf %253, %254 : vector<16x128xf32>
    %256 = vector.extract_strided_slice %255 {offsets = [0, 0], sizes = [16, 32], strides = [1, 1]} : vector<16x128xf32> to vector<16x32xf32>
    %257 = arith.addf %180, %256 : vector<16x32xf32>
    %cst_72 = arith.constant dense<0.000000e+00> : vector<16xf32>
    %258 = vector.multi_reduction <add>, %257, %cst_72 [1] : vector<16x32xf32> to vector<16xf32>
    %259 = vector.shape_cast %258 : vector<16xf32> to vector<16x1xf32>
    %cst_73 = arith.constant 3.200000e+01 : f32
    %260 = vector.broadcast %cst_73 : f32 to vector<16x1xf32>
    %261 = arith.divf %259, %260 : vector<16x1xf32>
    %262 = vector.broadcast %261 : vector<16x1xf32> to vector<16x32xf32>
    %263 = arith.subf %257, %262 : vector<16x32xf32>
    %264 = arith.mulf %263, %263 : vector<16x32xf32>
    %cst_74 = arith.constant dense<0.000000e+00> : vector<16xf32>
    %265 = vector.multi_reduction <add>, %264, %cst_74 [1] : vector<16x32xf32> to vector<16xf32>
    %266 = vector.shape_cast %265 : vector<16xf32> to vector<16x1xf32>
    %cst_75 = arith.constant 3.200000e+01 : f32
    %267 = vector.broadcast %cst_75 : f32 to vector<16x1xf32>
    %268 = arith.divf %266, %267 : vector<16x1xf32>
    %269 = vector.broadcast %261 : vector<16x1xf32> to vector<16x32xf32>
    %270 = arith.subf %257, %269 : vector<16x32xf32>
    %cst_76 = arith.constant 9.99999974E-6 : f32
    %271 = vector.broadcast %cst_76 : f32 to vector<16x1xf32>
    %272 = arith.addf %268, %271 : vector<16x1xf32>
    %273 = math.rsqrt %272 : vector<16x1xf32>
    %274 = vector.broadcast %273 : vector<16x1xf32> to vector<16x32xf32>
    %275 = arith.mulf %270, %274 : vector<16x32xf32>
    %276 = vector.broadcast %10 : vector<1x32xf32> to vector<16x32xf32>
    %277 = arith.mulf %275, %276 : vector<16x32xf32>
    %278 = vector.broadcast %11 : vector<1x32xf32> to vector<16x32xf32>
    %279 = arith.addf %277, %278 : vector<16x32xf32>
    %cst_77 = arith.constant dense<0.000000e+00> : vector<16x128xf32>
    %280 = tpu.matmul %279, %3, %cst_77 {dimension_numbers = #tpu.dot_dimension_numbers<[1], [0], [0], [1], [0, 0, 1, 1], [], []>} : vector<16x32xf32>, vector<32x128xf32>, vector<16x128xf32> -> vector<16x128xf32>
    %281 = vector.broadcast %8 : vector<1x128xf32> to vector<16x128xf32>
    %282 = arith.addf %280, %281 : vector<16x128xf32>
    %283 = vector.extract_strided_slice %282 {offsets = [0, 0], sizes = [16, 64], strides = [1, 1]} : vector<16x128xf32> to vector<16x64xf32>
    %cst_78 = arith.constant 0.000000e+00 : f32
    %284 = vector.broadcast %cst_78 : f32 to vector<16x64xf32>
    %285 = arith.maximumf %283, %284 : vector<16x64xf32>
    %cst_79 = arith.constant dense<0.000000e+00> : vector<16x128xf32>
    %286 = tpu.matmul %285, %4, %cst_79 {dimension_numbers = #tpu.dot_dimension_numbers<[1], [0], [0], [1], [0, 0, 1, 1], [], []>} : vector<16x64xf32>, vector<64x128xf32>, vector<16x128xf32> -> vector<16x128xf32>
    %287 = vector.broadcast %9 : vector<1x128xf32> to vector<16x128xf32>
    %288 = arith.addf %286, %287 : vector<16x128xf32>
    %289 = vector.extract_strided_slice %288 {offsets = [0, 0], sizes = [16, 32], strides = [1, 1]} : vector<16x128xf32> to vector<16x32xf32>
    %290 = arith.addf %279, %289 : vector<16x32xf32>
    %cst_80 = arith.constant dense<0.000000e+00> : vector<16xf32>
    %291 = vector.multi_reduction <add>, %290, %cst_80 [1] : vector<16x32xf32> to vector<16xf32>
    %292 = vector.shape_cast %291 : vector<16xf32> to vector<16x1xf32>
    %cst_81 = arith.constant 3.200000e+01 : f32
    %293 = vector.broadcast %cst_81 : f32 to vector<16x1xf32>
    %294 = arith.divf %292, %293 : vector<16x1xf32>
    %295 = vector.broadcast %294 : vector<16x1xf32> to vector<16x32xf32>
    %296 = arith.subf %290, %295 : vector<16x32xf32>
    %297 = arith.mulf %296, %296 : vector<16x32xf32>
    %cst_82 = arith.constant dense<0.000000e+00> : vector<16xf32>
    %298 = vector.multi_reduction <add>, %297, %cst_82 [1] : vector<16x32xf32> to vector<16xf32>
    %299 = vector.shape_cast %298 : vector<16xf32> to vector<16x1xf32>
    %cst_83 = arith.constant 3.200000e+01 : f32
    %300 = vector.broadcast %cst_83 : f32 to vector<16x1xf32>
    %301 = arith.divf %299, %300 : vector<16x1xf32>
    %302 = vector.broadcast %294 : vector<16x1xf32> to vector<16x32xf32>
    %303 = arith.subf %290, %302 : vector<16x32xf32>
    %cst_84 = arith.constant 9.99999974E-6 : f32
    %304 = vector.broadcast %cst_84 : f32 to vector<16x1xf32>
    %305 = arith.addf %301, %304 : vector<16x1xf32>
    %306 = math.rsqrt %305 : vector<16x1xf32>
    %307 = vector.broadcast %306 : vector<16x1xf32> to vector<16x32xf32>
    %308 = arith.mulf %303, %307 : vector<16x32xf32>
    %309 = vector.broadcast %12 : vector<1x32xf32> to vector<16x32xf32>
    %310 = arith.mulf %308, %309 : vector<16x32xf32>
    %311 = vector.broadcast %13 : vector<1x32xf32> to vector<16x32xf32>
    %312 = arith.addf %310, %311 : vector<16x32xf32>
    %c0_85 = arith.constant 0 : index
    %c0_86 = arith.constant 0 : index
    %313 = vector.load %arg2[%c0_85, %c0_86] : memref<16x32xf32, #tpu.memory_space<vmem>>, vector<16x32xf32>
    tpu.vector_store %arg2[%c0_85, %c0_86], %312 {strides = array<i32>} : memref<16x32xf32, #tpu.memory_space<vmem>>, vector<16x32xf32>,
    return
  }
}

</mosaic_0001>

<bundles_post_ra>
// kernel: transformer_encoder.1
= control target key start
LH: loop header
LB: loop body
LE: loop exit
PB: predicated region body
PF: predicated region fallthrough
CT: control target
= control target key end

     0   :  { %7 = vsyncpa [#allocation3], 0  ;;  %s3950_s0 = inlined_call_operand.hbm [shape: f32[16,32], index: 0, kind: input, shape index: {}]   ;;  %s3951_s1 = inlined_call_operand.hbm [shape: f32[168,128], index: 1, kind: input, shape index: {}]   ;;  %s3952_s2 = inlined_call_operand.hbm [shape: f32[16,32], index: 2, kind: output, shape index: {}]  }
   0x1   :  { %8 = vsyncpa [#allocation6], 0 }
   0x2   :  { %9 = vsyncpa [#allocation4], 0  ;;  %s3426_s9 = smov [#allocation2]   ;;  %s3354_s13 = scalar_lea.hbm %s3950_s0, 256 }
   0x3   :  { %s15_s10 = sshll.u32 %s3426_s9, 4  ;;  %p3355_p0 = scmp.ne.s32.totalorder %s3950_s0, %s3354_s13  ;;  %s16_s10 = int_to_ptr.vmem [resolvable:$true] %s15_s10 }
   0x4   :  { %p3358_p1 = scmp.lt.u32.totalorder %s3354_s13, %s3950_s0 }
   0x6   :  { %p3360_p2 = pnand %p3358_p1, %p3355_p0 }
   0x8   :  { %3363 = shalt.err (!%p3360_p2)
}
   0x9   :  { %s3364_s18 = scalar_lea.vmem %s16_s10, 256  ;;  %p3369_p4 = scmp.lt.s32.totalorder %s16_s10, %s16_s10 }
   0xa   :  { %p3365_p3 = scmp.ne.s32.totalorder %s16_s10, %s3364_s18  ;;  %p3370_p5 = scmp.lt.s32.totalorder %s3364_s18, %s3364_s18 }
   0xc   :  { %p3371_p6 = por %p3370_p5, %p3369_p4 }
   0xe   :  { %p3372_p7 = pnand %p3371_p6, %p3365_p3 }
  0x10   :  { %3375 = shalt.err (!%p3372_p7)
}
  0x11   :  { %s3427_s19 = smov 128   ;;  %s3428_s20 = smov 8  }
  0x12   :  { %21 = dma.hbm_to_vmem [thread:$0]  %s3950_s0, 256, %s16_s10, [#allocation3], %s3427_s19, %s3427_s19, %s3428_s20  }
  0x13   :  { %s3429_s23 = smov [#allocation5]   ;;  %s3376_s27 = scalar_lea.hbm %s3951_s1, 2688 }
  0x14   :  { %s27_s24 = sshll.u32 %s3429_s23, 4  ;;  %p3377_p8 = scmp.ne.s32.totalorder %s3951_s1, %s3376_s27  ;;  %s28_s24 = int_to_ptr.vmem [resolvable:$true] %s27_s24 }
  0x15   :  { %p3380_p9 = scmp.lt.u32.totalorder %s3376_s27, %s3951_s1 }
  0x17   :  { %p3382_p10 = pnand %p3380_p9, %p3377_p8 }
  0x19   :  { %3385 = shalt.err (!%p3382_p10)
}
  0x1a   :  { %s3386_s4 = scalar_lea.vmem %s28_s24, 2688  ;;  %p3391_p12 = scmp.lt.s32.totalorder %s28_s24, %s28_s24 }
  0x1b   :  { %p3387_p11 = scmp.ne.s32.totalorder %s28_s24, %s3386_s4  ;;  %p3392_p13 = scmp.lt.s32.totalorder %s3386_s4, %s3386_s4 }
  0x1d   :  { %p3393_p0 = por %p3392_p13, %p3391_p12 }
  0x1f   :  { %p3394_p1 = pnand %p3393_p0, %p3387_p11 }
  0x21   :  { %3397 = shalt.err (!%p3394_p1)
}
  0x22   :  { %33 = dma.hbm_to_vmem [thread:$0]  %s3951_s1, 2688, %s28_s24, [#allocation6], %s3427_s19, %s3427_s19, %s3428_s20  }
  0x23   :  { %3420 = dma.done.wait [#allocation3], 256  }
  0x24   :  { %3421 = vsyncadd [#allocation3], 4294967040 }
  0x25   :  { %3422 = dma.done.wait [#allocation6], 2688  }
  0x26   :  { %3423 = vsyncadd [#allocation6], 4294964608  ;;  %vm110_vm0 = vcmask 261120   ;;  %v42_v0 = vld [vmem:[#allocation5] sm:$0xff]  ;;  %v43_v1 = vld [vmem:[#allocation5 + $0x8] sm:$0xff]  ;;  %v63_v8 = vlaneseq  ;;  %vm198_vm1 = vcmask 64512  }
  0x27   :  { %v44_v2 = vld [vmem:[#allocation5 + $0x10] sm:$0xff]  ;;  %v3489_v3 = vpack.c.bf16 %v43_v1, %v42_v0  ;;  %v45_v4 = vld [vmem:[#allocation5 + $0x18] sm:$0xff]  ;;  %v3508_v11 = vld [vmem:[#allocation5 + $0xa0] sm:$0xff]  ;;  %s3430_s1 = smov 120   ;;  %s3431_s6 = smov 96   ;;  %vm284_vm5 = vcmask 130048  }
  0x28   :  { %v3491_v5 = vld [vmem:[#allocation2] sm:$0xff]  ;;  %v3493_v6 = vpack.c.bf16 %v45_v4, %v44_v2  ;;  %v3501_v7 = vld [vmem:[#allocation2 + $0x8] sm:$0xff]  ;;  %v3505_v9 = vshrl.u32 %v63_v8, 7  ;;  %s3432_s7 = smov 88   ;;  %vm3535_vm2 = vmpackc.low %vm198_vm1, %vm198_vm1  ;;  %v67_v30 = vand.u32 127, %v63_v8  ;;  %s3433_s8 = smov 64  }
  0x29   :  { %2808 = vmatprep.mubr.msk.f32.mxu1 %vm110_vm0, %v3491_v5  ;;  %3017 = vmatprep.subr.bf16.mxu1 %v3489_v3  ;;  %s3434_s9 = smov 80   ;;  %s3435_s10 = smov 56   ;;  %vm1028_vm6 = vcmask 195584   ;;  %vm1248_vm7 = vcmask 523264  }
  0x2a   :  { %3019 = vmatpush3.bf16.msra.mxu1 %v3489_v3  ;;  %v108_v10 = vsub.s32 0, %v3505_v9  ;;  %v65_v29 = vadd.s32 8, %v3505_v9  ;;  %v96_v32 = vand.u32 1, %v67_v30  ;;  %v72_v33 = vand.u32 1, %v3505_v9  ;;  %s3436_s11 = smov 112   ;;  %s3437_s12 = smov 72  }
  0x2b   :  { %3021 = vmatprep.subr.bf16.mxu1 %v3493_v6  ;;  %s3438_s13 = smov 104   ;;  %s3439_s14 = smov 48  }
  0x2c   :  { %v3511_v12 = vrot.slane %v3508_v11, %v108_v10  ;;  %v79_v31 = vand.u32 1, %v65_v29  ;;  %vm3557_vm4 = vcmp.eq.s32.totalorder %v72_v33, %v96_v32  ;;  %s3440_s15 = smov 40   ;;  %s3441_s16 = smov 16  }
  0x2d   :  { %s3442_s17 = smov 24   ;;  %s3443_s18 = smov [#allocation7]  }
  0x2e   :  { %3023 = vmatpush3.bf16.msra.mxu1 %v3493_v6  ;;  %vm3553_vm3 = vcmp.eq.s32.totalorder %v79_v31, %v96_v32  ;;  %s2603_s21 = sshll.u32 %s3443_s18, 4  ;;  %s2604_s21 = int_to_ptr.vmem [resolvable:$true] %s2603_s21 }
  0x2f   :  { %s3398_s22 = scalar_lea.vmem %s2604_s21, 256  ;;  %p3403_p3 = scmp.lt.s32.totalorder %s2604_s21, %s2604_s21 }
  0x30   :  { %p3399_p2 = scmp.ne.s32.totalorder %s2604_s21, %s3398_s22  ;;  %p3404_p4 = scmp.lt.s32.totalorder %s3398_s22, %s3398_s22 }
  0x31   :  { %2809 = vmatmul.mubr.msk.f32.vlgmr.msra.gmra.mrb[0].mxu1 %vm110_vm0, %v3501_v7 }
  0x32   :  { %p3405_p5 = por %p3404_p4, %p3403_p3 }
  0x34   :  { %p3406_p6 = pnand %p3405_p5, %p3399_p2 }
 0x104   :  { %v2810_v13 = vpop.f32.mrb[0].mxu1 }
 0x105   :  { %v3514_v14 = vadd.f32 %v2810_v13, %v3511_v12  ;;  %v183_v15 = vpop.f32.mrb[1].mxu1 }
 0x106   :  { %v3517_v16 = vadd.f32 %v183_v15, %v3511_v12 }
 0x108   :  { %394 = vrot.lane.b32.xlu1 %v3517_v16, %s3430_s1  ;;  %2815 = vmatprep.mubr.msk.f32.mxu1 %vm198_vm1, %v3517_v16  ;;  %v3525_v17 = vpack.i.bf16 %v3514_v14, %v3517_v16 }
 0x10a   :  { %3195 = vrot.lane.b32.xlu0 %v3525_v17, %s3431_s6 }
 0x10c   :  { %396 = vrot.lane.b32.xlu1 %v3514_v14, %s3430_s1 }
 0x10e   :  { %3200 = vrot.lane.b32.xlu0 %v3525_v17, %s3432_s7 }
 0x17a   :  { %v395_v27 = vpop.permute.xlu1 %394 }
 0x17c   :  { %v3196_v18 = vpop.permute.xlu0 %3195 }
 0x17d   :  { %v3198_v19 = vunpack.i.h.bf16 %v3196_v18  ;;  %v3197_v20 = vunpack.i.l.bf16 %v3196_v18 }
 0x17e   :  { %v397_v28 = vpop.permute.xlu1 %396 }
 0x17f   :  { %v3024_v22 = vpack.c.bf16 %v3198_v19, %v3197_v20 }
 0x180   :  { %v3201_v23 = vpop.permute.xlu0 %3200 }
 0x181   :  { %v3203_v24 = vunpack.i.h.bf16 %v3201_v23  ;;  %v3202_v25 = vunpack.i.l.bf16 %v3201_v23  ;;  %3026 = vmatprep.subr.msk.bf16.mxu1 %vm3535_vm2, %v3024_v22 }
 0x182   :  { %3029 = vmatpush3.bf16.xpose.msk.msra.mxu1 %vm3535_vm2, %v3024_v22 }
 0x183   :  { %v3034_v26 = vpack.c.bf16 %v3203_v24, %v3202_v25 }
 0x185   :  { %3036 = vmatprep.subr.msk.bf16.mxu1 %vm3535_vm2, %v3034_v26 }
 0x189   :  { %2816 = vmatmul.mubr.msk.f32.vlgmr.msra.gmra.mrb[2].mxu1 %vm198_vm1, %v3514_v14 }
 0x18a   :  { %3039 = vmatpush3.bf16.xpose.msk.msra.mxu1 %vm3535_vm2, %v3034_v26  ;;  %2829 = vmatprep.mubr.msk.f32.mxu1 %vm198_vm1, %v395_v27 }
 0x191   :  { %2830 = vmatmul.mubr.msk.f32.vlgmr.msra.gmra.mrb[4].mxu1 %vm198_vm1, %v397_v28 }
 0x25c   :  { %v2817_v36 = vpop.f32.mrb[2].mxu1 }
 0x25d   :  { %v283_v37 = vsel %vm3553_vm3, %v2817_v36, -1e+30  ;;  %v273_v38 = vpop.f32.mrb[3].mxu1 }
 0x25e   :  { %v282_v39 = vsel %vm3557_vm4, %v273_v38, -1e+30  ;;  %v288_v40 = vsel %vm284_vm5, %v283_v37, -inf }
 0x25f   :  { %289 = vmax.xlane.f32.xlu1 %v288_v40  ;;  %v285_v41 = vsel %vm284_vm5, %v282_v39, -inf }
 0x260   :  { %286 = vmax.xlane.f32.xlu0 %v285_v41 }
 0x264   :  { %v2831_v42 = vpop.f32.mrb[4].mxu1 }
 0x265   :  { %v476_v43 = vpop.f32.mrb[5].mxu1  ;;  %v486_v46 = vsel %vm3553_vm3, %v2831_v42, -1e+30 }
 0x266   :  { %v485_v44 = vsel %vm3557_vm4, %v476_v43, -1e+30  ;;  %v490_v47 = vsel %vm284_vm5, %v486_v46, -inf }
 0x267   :  { %v487_v45 = vsel %vm284_vm5, %v485_v44, -inf }
 0x268   :  { %488 = vmax.xlane.f32.xlu0 %v487_v45 }
 0x26c   :  { %491 = vmax.xlane.f32.xlu0 %v490_v47 }
 0x270   :  { %3205 = vrot.lane.b32.xlu1 %v3525_v17, %s3433_s8 }
 0x2ec   :  { %v290_v48 = vpop.xlane.xlu1 %289 }
 0x2ed   :  { %v292_v49 = vsub.f32 %v283_v37, %v290_v48  ;;  %v287_v50 = vpop.xlane.xlu0 %286 }
 0x2ee   :  { %v291_v51 = vsub.f32 %v282_v39, %v287_v50 }
 0x2ef   :  { %v295_v52 = vmul.f32 1.442695, %v292_v49 }
 0x2f0   :  { %v293_v53 = vmul.f32 1.442695, %v291_v51  ;;  %v3206_v54 = vpop.permute.xlu1 %3205 }
 0x2f1   :  { %3274 = vpow2.f32 %v295_v52  ;;  %v3208_v55 = vunpack.i.h.bf16 %v3206_v54  ;;  %v3207_v56 = vunpack.i.l.bf16 %v3206_v54 }
 0x2f2   :  { %3276 = vpow2.f32 %v293_v53 }
 0x2f3   :  { %v3030_v57 = vpack.c.bf16 %v3208_v55, %v3207_v56 }
 0x2f5   :  { %3031 = vmatprep.subr.bf16.mxu0 %v3030_v57  ;;  %v489_v58 = vpop.xlane.xlu0 %488 }
 0x2f6   :  { %3033 = vmatpush3.bf16.msra.mxu0 %v3030_v57  ;;  %v493_v8 = vsub.f32 %v485_v44, %v489_v58 }
 0x2f8   :  { %v495_v10 = vmul.f32 1.442695, %v493_v8 }
 0x2f9   :  { %v492_v59 = vpop.xlane.xlu0 %491 }
 0x2fa   :  { %v494_v60 = vsub.f32 %v486_v46, %v492_v59 }
 0x2fb   :  { %v3275_v61 = vpop.eup %3274 }
 0x2fc   :  { %v3277_v62 = vpop.eup %3276  ;;  %v497_v63 = vmul.f32 1.442695, %v494_v60  ;;  %v300_v0 = vsel %vm284_vm5, %v3275_v61, 0.0 }
 0x2fd   :  { %301 = vadd.xlane.f32.xlu0 %v300_v0  ;;  %v297_v1 = vsel %vm284_vm5, %v3277_v62, 0.0 }
 0x2fe   :  { %3278 = vpow2.f32 %v497_v63  ;;  %298 = vadd.xlane.f32.xlu1 %v297_v1 }
 0x2ff   :  { %3280 = vpow2.f32 %v495_v10 }
 0x308   :  { %v3279_v2 = vpop.eup %3278 }
 0x309   :  { %v502_v4 = vsel %vm284_vm5, %v3279_v2, 0.0  ;;  %v3281_v13 = vpop.eup %3280 }
 0x30a   :  { %503 = vadd.xlane.f32.xlu0 %v502_v4  ;;  %v499_v15 = vsel %vm284_vm5, %v3281_v13, 0.0 }
 0x30f   :  { %3215 = vrot.lane.b32.xlu1 %v3525_v17, %s3434_s9 }
 0x320   :  { %3210 = vrot.lane.b32.xlu0 %v3525_v17, %s3435_s10 }
 0x324   :  { %598 = vrot.lane.b32.xlu0 %v3514_v14, %s3436_s11 }
 0x333   :  { %500 = vadd.xlane.f32.xlu1 %v499_v15 }
 0x344   :  { %596 = vrot.lane.b32.xlu1 %v3517_v16, %s3436_s11 }
 0x38a   :  { %v302_v18 = vpop.xlane.xlu0 %301 }
 0x38b   :  { %3282 = vrcp.f32 %v302_v18  ;;  %v299_v19 = vpop.xlane.xlu1 %298 }
 0x38c   :  { %3284 = vrcp.f32 %v299_v19 }
 0x38f   :  { %v3216_v26 = vpop.permute.xlu1 %3215 }
 0x390   :  { %v3218_v28 = vunpack.i.h.bf16 %v3216_v26  ;;  %v3217_v29 = vunpack.i.l.bf16 %v3216_v26 }
 0x392   :  { %v3044_v33 = vpack.c.bf16 %v3218_v28, %v3217_v29 }
 0x395   :  { %v3283_v20 = vpop.eup %3282 }
 0x396   :  { %v3285_v22 = vpop.eup %3284  ;;  %v306_v25 = vmul.f32 %v3283_v20, %v3275_v61 }
 0x397   :  { %v504_v23 = vpop.xlane.xlu0 %503  ;;  %v305_v24 = vmul.f32 %v3285_v22, %v3277_v62 }
 0x398   :  { %3286 = vrcp.f32 %v504_v23 }
 0x399   :  { %2822 = vmatprep.mubr.msk.f32.mxu0 %vm284_vm5, %v305_v24 }
 0x39a   :  { %2823 = vmatmul.mubr.msk.f32.vlgmr.msra.gmra.mrb[0].mxu0 %vm284_vm5, %v306_v25 }
 0x39b   :  { %v3211_v27 = vpop.permute.xlu0 %3210 }
 0x39c   :  { %v3213_v30 = vunpack.i.h.bf16 %v3211_v27  ;;  %v3212_v31 = vunpack.i.l.bf16 %v3211_v27 }
 0x39e   :  { %v3040_v32 = vpack.c.bf16 %v3213_v30, %v3212_v31 }
 0x39f   :  { %v599_v42 = vpop.permute.xlu0 %598 }
 0x3a0   :  { %3041 = vmatprep.subr.bf16.mxu0 %v3040_v32 }
 0x3a1   :  { %3043 = vmatpush3.bf16.msra.mxu0 %v3040_v32 }
 0x3a2   :  { %3046 = vmatprep.subr.msk.bf16.mxu0 %vm3535_vm2, %v3044_v33  ;;  %v3287_v37 = vpop.eup %3286 }
 0x3a3   :  { %v508_v40 = vmul.f32 %v3287_v37, %v3279_v2 }
 0x3c0   :  { %v501_v36 = vpop.xlane.xlu1 %500 }
 0x3c1   :  { %3288 = vrcp.f32 %v501_v36 }
 0x3c4   :  { %v597_v41 = vpop.permute.xlu1 %596 }
 0x3cb   :  { %v3289_v38 = vpop.eup %3288 }
 0x3cc   :  { %v507_v39 = vmul.f32 %v3289_v38, %v3281_v13 }
 0x3ce   :  { %2836 = vmatprep.mubr.msk.f32.mxu0 %vm284_vm5, %v507_v39 }
 0x3cf   :  { %2837 = vmatmul.mubr.msk.f32.vlgmr.msra.gmra.mrb[2].mxu0 %vm284_vm5, %v508_v40 }
 0x3d0   :  { %3049 = vmatpush3.bf16.xpose.msk.msra.mxu0 %vm3535_vm2, %v3044_v33  ;;  %2843 = vmatprep.mubr.msk.f32.mxu0 %vm198_vm1, %v597_v41 }
 0x3d7   :  { %2844 = vmatmul.mubr.msk.f32.vlgmr.msra.gmra.mrb[4].mxu0 %vm198_vm1, %v599_v42 }
 0x46d   :  { %v3597_v43 = vpop.f32.mrb[0].mxu0 }
 0x46e   :  { %v3599_v44 = vpop.f32.mrb[1].mxu0 }
 0x4a2   :  { %v3601_v45 = vpop.f32.mrb[2].mxu0 }
 0x4a3   :  { %v3603_v46 = vpop.f32.mrb[3].mxu0 }
 0x4aa   :  { %v2845_v47 = vpop.f32.mrb[4].mxu0 }
 0x4ab   :  { %v688_v48 = vsel %vm3553_vm3, %v2845_v47, -1e+30  ;;  %v678_v49 = vpop.f32.mrb[5].mxu0 }
 0x4ac   :  { %v687_v50 = vsel %vm3557_vm4, %v678_v49, -1e+30  ;;  %v692_v51 = vsel %vm284_vm5, %v688_v48, -inf }
 0x4ad   :  { %693 = vmax.xlane.f32.xlu0 %v692_v51  ;;  %v689_v52 = vsel %vm284_vm5, %v687_v50, -inf }
 0x4ae   :  { %690 = vmax.xlane.f32.xlu1 %v689_v52 }
 0x53a   :  { %v694_v53 = vpop.xlane.xlu0 %693 }
 0x53b   :  { %v696_v54 = vsub.f32 %v688_v48, %v694_v53  ;;  %v691_v55 = vpop.xlane.xlu1 %690 }
 0x53c   :  { %v695_v56 = vsub.f32 %v687_v50, %v691_v55 }
 0x53d   :  { %v699_v57 = vmul.f32 1.442695, %v696_v54 }
 0x53e   :  { %v697_v58 = vmul.f32 1.442695, %v695_v56  ;;  %v47_v56 = vld [vmem:[#allocation5 + $0x28] sm:$0xff] }
 0x53f   :  { %3290 = vpow2.f32 %v699_v57  ;;  %v48_v57 = vld [vmem:[#allocation5 + $0x30] sm:$0xff] }
 0x540   :  { %3292 = vpow2.f32 %v697_v58 }
 0x549   :  { %v3291_v59 = vpop.eup %3290 }
 0x54a   :  { %v3293_v60 = vpop.eup %3292  ;;  %v704_v61 = vsel %vm284_vm5, %v3291_v59, 0.0 }
 0x54b   :  { %705 = vadd.xlane.f32.xlu1 %v704_v61  ;;  %v701_v62 = vsel %vm284_vm5, %v3293_v60, 0.0 }
 0x54c   :  { %702 = vadd.xlane.f32.xlu0 %v701_v62 }
 0x55c   :  { %3225 = vrot.lane.b32.xlu1 %v3525_v17, %s3437_s12 }
 0x560   :  { %798 = vrot.lane.b32.xlu1 %v3517_v16, %s3438_s13 }
 0x562   :  { %3220 = vrot.lane.b32.xlu0 %v3525_v17, %s3439_s14 }
 0x566   :  { %800 = vrot.lane.b32.xlu0 %v3514_v14, %s3438_s13 }
 0x5d8   :  { %v706_v63 = vpop.xlane.xlu1 %705 }
 0x5d9   :  { %3294 = vrcp.f32 %v706_v63  ;;  %v703_v0 = vpop.xlane.xlu0 %702 }
 0x5da   :  { %3296 = vrcp.f32 %v703_v0 }
 0x5dc   :  { %v3226_v1 = vpop.permute.xlu1 %3225 }
 0x5dd   :  { %v3221_v2 = vpop.permute.xlu0 %3220  ;;  %v3228_v4 = vunpack.i.h.bf16 %v3226_v1  ;;  %v3227_v8 = vunpack.i.l.bf16 %v3226_v1 }
 0x5de   :  { %v3223_v10 = vunpack.i.h.bf16 %v3221_v2  ;;  %v3222_v13 = vunpack.i.l.bf16 %v3221_v2 }
 0x5df   :  { %v3054_v18 = vpack.c.bf16 %v3228_v4, %v3227_v8 }
 0x5e0   :  { %v3050_v15 = vpack.c.bf16 %v3223_v10, %v3222_v13  ;;  %v799_v22 = vpop.permute.xlu1 %798 }
 0x5e1   :  { %v801_v23 = vpop.permute.xlu0 %800 }
 0x5e2   :  { %3051 = vmatprep.subr.bf16.mxu1 %v3050_v15 }
 0x5e3   :  { %v3295_v16 = vpop.eup %3294  ;;  %3053 = vmatpush3.bf16.msra.mxu1 %v3050_v15 }
 0x5e4   :  { %v3297_v19 = vpop.eup %3296  ;;  %3056 = vmatprep.subr.msk.bf16.mxu1 %vm3535_vm2, %v3054_v18  ;;  %v710_v20 = vmul.f32 %v3295_v16, %v3291_v59  ;;  %v49_v59 = vld [vmem:[#allocation5 + $0x38] sm:$0xff] }
 0x5e5   :  { %v709_v14 = vmul.f32 %v3297_v19, %v3293_v60  ;;  %v3649_v60 = vpack.c.bf16 %v49_v59, %v48_v57 }
 0x5e7   :  { %2850 = vmatprep.mubr.msk.f32.mxu1 %vm284_vm5, %v709_v14  ;;  %v1033_v14 = vsub.s32 1, %v3505_v9 }
 0x5e8   :  { %2851 = vmatmul.mubr.msk.f32.vlgmr.msra.gmra.mrb[6].mxu1 %vm284_vm5, %v710_v20 }
 0x5e9   :  { %2857 = vmatprep.mubr.msk.f32.mxu1 %vm198_vm1, %v799_v22 }
 0x5ec   :  { %3059 = vmatpush3.bf16.xpose.msk.msra.mxu1 %vm3535_vm2, %v3054_v18 }
 0x5f3   :  { %2858 = vmatmul.mubr.msk.f32.vlgmr.msra.gmra.mrb[8].mxu1 %vm198_vm1, %v801_v23 }
 0x6bb   :  { %v2852_v24 = vpop.f32.mrb[6].mxu1 }
 0x6bc   :  { %v789_v25 = vpop.f32.mrb[7].mxu1 }
 0x6c6   :  { %v2859_v26 = vpop.f32.mrb[8].mxu1 }
 0x6c7   :  { %v890_v27 = vsel %vm3553_vm3, %v2859_v26, -1e+30  ;;  %v880_v28 = vpop.f32.mrb[9].mxu1 }
 0x6c8   :  { %v889_v29 = vsel %vm3557_vm4, %v880_v28, -1e+30  ;;  %v894_v30 = vsel %vm284_vm5, %v890_v27, -inf }
 0x6c9   :  { %895 = vmax.xlane.f32.xlu0 %v894_v30  ;;  %v891_v31 = vsel %vm284_vm5, %v889_v29, -inf }
 0x6ca   :  { %892 = vmax.xlane.f32.xlu1 %v891_v31 }
 0x756   :  { %v896_v32 = vpop.xlane.xlu0 %895 }
 0x757   :  { %v898_v33 = vsub.f32 %v890_v27, %v896_v32  ;;  %v893_v36 = vpop.xlane.xlu1 %892 }
 0x758   :  { %v897_v37 = vsub.f32 %v889_v29, %v893_v36 }
 0x759   :  { %v901_v38 = vmul.f32 1.442695, %v898_v33 }
 0x75a   :  { %v899_v39 = vmul.f32 1.442695, %v897_v37 }
 0x75b   :  { %3298 = vpow2.f32 %v901_v38 }
 0x75c   :  { %3300 = vpow2.f32 %v899_v39  ;;  %v51_v39 = vld [vmem:[#allocation5 + $0x48] sm:$0xff] }
 0x765   :  { %v3299_v40 = vpop.eup %3298 }
 0x766   :  { %v3301_v41 = vpop.eup %3300  ;;  %v906_v42 = vsel %vm284_vm5, %v3299_v40, 0.0 }
 0x767   :  { %907 = vadd.xlane.f32.xlu1 %v906_v42  ;;  %v903_v47 = vsel %vm284_vm5, %v3301_v41, 0.0  ;;  %v53_v42 = vld [vmem:[#allocation5 + $0x58] sm:$0xff] }
 0x768   :  { %904 = vadd.xlane.f32.xlu0 %v903_v47 }
 0x778   :  { %1002 = vrot.lane.b32.xlu1 %v3603_v46, %s3428_s20 }
 0x77c   :  { %1004 = vrot.lane.b32.xlu1 %v3601_v45, %s3428_s20 }
 0x77e   :  { %3230 = vrot.lane.b32.xlu0 %v3525_v17, %s3440_s15  ;;  %v46_v17 = vld [vmem:[#allocation5 + $0x20] sm:$0xff] }
 0x77f   :  { %v3647_v58 = vpack.c.bf16 %v47_v56, %v46_v17 }
 0x780   :  { %1012 = vrot.lane.b32.xlu1 %v2852_v24, %s3441_s16 }
 0x782   :  { %1010 = vrot.lane.b32.xlu0 %v789_v25, %s3441_s16 }
 0x7f4   :  { %v908_v48 = vpop.xlane.xlu1 %907 }
 0x7f5   :  { %3302 = vrcp.f32 %v908_v48  ;;  %v905_v49 = vpop.xlane.xlu0 %904  ;;  %v54_v48 = vld [vmem:[#allocation5 + $0x60] sm:$0xff] }
 0x7f6   :  { %3304 = vrcp.f32 %v905_v49  ;;  %v55_v49 = vld [vmem:[#allocation5 + $0x68] sm:$0xff] }
 0x7f8   :  { %v1003_v63 = vpop.permute.xlu1 %1002 }
 0x7f9   :  { %v3231_v50 = vpop.permute.xlu0 %3230  ;;  %v1024_v4 = vsel %vm198_vm1, %v3599_v44, %v1003_v63  ;;  %v3669_v44 = vrot.slane %v3508_v11, %v1033_v14  ;;  %v1153_v63 = vsub.s32 5, %v3505_v9  ;;  %v61_v14 = vld [vmem:[#allocation5 + $0x98] sm:$0xff] }
 0x7fa   :  { %v3233_v51 = vunpack.i.h.bf16 %v3231_v50  ;;  %v3232_v52 = vunpack.i.l.bf16 %v3231_v50  ;;  %v56_v50 = vld [vmem:[#allocation5 + $0x70] sm:$0xff] }
 0x7fc   :  { %v3060_v46 = vpack.c.bf16 %v3233_v51, %v3232_v52  ;;  %v1005_v0 = vpop.permute.xlu1 %1004  ;;  %v3688_v51 = vpack.c.bf16 %v55_v49, %v54_v48  ;;  %v57_v52 = vld [vmem:[#allocation5 + $0x78] sm:$0xff] }
 0x7fd   :  { %v1011_v2 = vpop.permute.xlu0 %1010  ;;  %v1025_v10 = vsel %vm198_vm1, %v3597_v43, %v1005_v0 }
 0x7fe   :  { %3061 = vmatprep.subr.bf16.mxu0 %v3060_v46  ;;  %v1026_v13 = vsel %vm284_vm5, %v1024_v4, %v1011_v2  ;;  %v3706_v4 = vrot.slane %v3508_v11, %v1153_v63 }
 0x7ff   :  { %v3303_v53 = vpop.eup %3302  ;;  %3063 = vmatpush3.bf16.msra.mxu0 %v3060_v46  ;;  %v3690_v46 = vpack.c.bf16 %v57_v52, %v56_v50 }
 0x800   :  { %v3305_v45 = vpop.eup %3304  ;;  %v912_v55 = vmul.f32 %v3303_v53, %v3299_v40  ;;  %3065 = vmatprep.subr.bf16.mxu0 %v3647_v58  ;;  %v1013_v1 = vpop.permute.xlu1 %1012  ;;  %v58_v53 = vld [vmem:[#allocation5 + $0x80] sm:$0xff] }
 0x801   :  { %v911_v54 = vmul.f32 %v3305_v45, %v3301_v41  ;;  %v1027_v18 = vsel %vm284_vm5, %v1025_v10, %v1013_v1  ;;  %v52_v41 = vld [vmem:[#allocation5 + $0x50] sm:$0xff]  ;;  %v59_v45 = vld [vmem:[#allocation5 + $0x88] sm:$0xff] }
 0x802   :  { %v3683_v47 = vpack.c.bf16 %v53_v42, %v52_v41 }
 0x803   :  { %2864 = vmatprep.mubr.msk.f32.mxu0 %vm284_vm5, %v911_v54  ;;  %v3695_v54 = vpack.c.bf16 %v59_v45, %v58_v53 }
 0x804   :  { %2865 = vmatmul.mubr.msk.f32.vlgmr.msra.gmra.mrb[6].mxu0 %vm284_vm5, %v912_v55 }
 0x805   :  { %3067 = vmatpush3.bf16.msra.mxu0 %v3647_v58 }
 0x806   :  { %3069 = vmatprep.subr.bf16.mxu0 %v3649_v60 }
 0x809   :  { %3071 = vmatpush3.bf16.msra.mxu0 %v3649_v60 }
 0x80a   :  { %3081 = vmatprep.subr.bf16.mxu0 %v3688_v51 }
 0x8d7   :  { %v2866_v61 = vpop.f32.mrb[6].mxu0 }
 0x8d8   :  { %1020 = vrot.lane.b32.xlu1 %v2866_v61, %s3442_s17  ;;  %v991_v62 = vpop.f32.mrb[7].mxu0 }
 0x8d9   :  { %1018 = vrot.lane.b32.xlu0 %v991_v62, %s3442_s17  ;;  %v1147_v62 = vsub.s32 4, %v3505_v9 }
 0x8db   :  { %v3703_v0 = vrot.slane %v3508_v11, %v1147_v62  ;;  %v1366_v62 = vsub.s32 7, %v3505_v9 }
 0x94a   :  { %v1021_v8 = vpop.permute.xlu1 %1020 }
 0x94b   :  { %v1019_v15 = vpop.permute.xlu0 %1018  ;;  %v1030_v19 = vsel %vm1028_vm6, %v1027_v18, %v1021_v8 }
 0x94c   :  { %v1029_v16 = vsel %vm1028_vm6, %v1026_v13, %v1019_v15 }
 0x94d   :  { %2875 = vmatprep.mubr.msk.f32.mxu0 %vm110_vm0, %v1029_v16 }
 0x94e   :  { %2876 = vmatmul.mubr.msk.f32.vlgmr.msra.gmra.mrb[8].mxu0 %vm110_vm0, %v1030_v19  ;;  %v60_v19 = vld [vmem:[#allocation5 + $0x90] sm:$0xff] }
 0x94f   :  { %3083 = vmatpush3.bf16.msra.mxu0 %v3688_v51 }
 0x950   :  { %3085 = vmatprep.subr.bf16.mxu0 %v3690_v46 }
 0x953   :  { %3087 = vmatpush3.bf16.msra.mxu0 %v3690_v46 }
 0x954   :  { %3089 = vmatprep.subr.bf16.mxu0 %v3695_v54 }
 0x957   :  { %3091 = vmatpush3.bf16.msra.mxu0 %v3695_v54 }
 0xa21   :  { %v2877_v20 = vpop.f32.mrb[8].mxu0 }
 0xa22   :  { %v1113_v43 = vadd.f32 %v2877_v20, %v3669_v44  ;;  %v1107_v22 = vpop.f32.mrb[9].mxu0  ;;  %v3717_v20 = vpack.c.bf16 %v61_v14, %v60_v19 }
 0xa23   :  { %v1108_v23 = vadd.f32 %v1107_v22, %v3669_v44 }
 0xa24   :  { %v1117_v24 = vadd.f32 %v1113_v43, %v3501_v7  ;;  %3093 = vmatprep.subr.bf16.mxu0 %v3717_v20  ;;  %v1159_v43 = vsub.s32 2, %v3505_v9 }
 0xa25   :  { %v1116_v25 = vadd.f32 %v1108_v23, %v3491_v5  ;;  %v50_v5 = vld [vmem:[#allocation5 + $0x40] sm:$0xff]  ;;  %3095 = vmatpush3.bf16.msra.mxu0 %v3717_v20 }
 0xa26   :  { %v1121_v26 = vsel %vm110_vm0, %v1117_v24, 0.0  ;;  %v3679_v40 = vpack.c.bf16 %v51_v39, %v50_v5  ;;  %v3723_v22 = vrot.slane %v3508_v11, %v1159_v43 }
 0xa27   :  { %1122 = vadd.xlane.f32.xlu1 %v1121_v26  ;;  %v1118_v27 = vsel %vm110_vm0, %v1116_v25, 0.0 }
 0xa28   :  { %1119 = vadd.xlane.f32.xlu0 %v1118_v27  ;;  %3073 = vmatprep.subr.bf16.mxu1 %v3679_v40  ;;  %v1246_v27 = vsub.s32 3, %v3505_v9 }
 0xa29   :  { %3075 = vmatpush3.bf16.msra.mxu1 %v3679_v40 }
 0xa2a   :  { %3077 = vmatprep.subr.bf16.mxu1 %v3683_v47 }
 0xa2d   :  { %3079 = vmatpush3.bf16.msra.mxu1 %v3683_v47 }
 0xa2e   :  { %3097 = vmatprep.subr.bf16.mxu1 %v3489_v3 }
 0xab4   :  { %v1123_v28 = vpop.xlane.xlu1 %1122 }
 0xab5   :  { %v1126_v29 = vmul.f32 0.03125, %v1123_v28  ;;  %v1120_v30 = vpop.xlane.xlu0 %1119  ;;  %v3731_v28 = vrot.slane %v3508_v11, %v1246_v27 }
 0xab6   :  { %v1125_v31 = vmul.f32 0.03125, %v1120_v30 }
 0xab7   :  { %v1128_v32 = vsub.f32 %v1117_v24, %v1126_v29 }
 0xab8   :  { %v1127_v33 = vsub.f32 %v1116_v25, %v1125_v31 }
 0xab9   :  { %v1130_v38 = vmul.f32 %v1128_v32, %v1128_v32 }
 0xaba   :  { %v1129_v36 = vmul.f32 %v1127_v33, %v1127_v33 }
 0xabb   :  { %v1134_v7 = vsel %vm110_vm0, %v1130_v38, 0.0 }
 0xabc   :  { %v1131_v37 = vsel %vm110_vm0, %v1129_v36, 0.0 }
 0xabd   :  { %1132 = vadd.xlane.f32.xlu0 %v1131_v37 }
 0xac1   :  { %1135 = vadd.xlane.f32.xlu0 %v1134_v7 }
 0xb4a   :  { %v1133_v55 = vpop.xlane.xlu0 %1132 }
 0xb4b   :  { %v1137_v17 = vmul.f32 0.03125, %v1133_v55 }
 0xb4d   :  { %v1139_v56 = vadd.f32 1e-05, %v1137_v17 }
 0xb4e   :  { %v1136_v57 = vpop.xlane.xlu0 %1135 }
 0xb4f   :  { %3306 = vrsqrt.f32 %v1139_v56  ;;  %v1138_v59 = vmul.f32 0.03125, %v1136_v57 }
 0xb51   :  { %v1140_v61 = vadd.f32 1e-05, %v1138_v59 }
 0xb53   :  { %3308 = vrsqrt.f32 %v1140_v61  ;;  %v1360_v61 = vsub.s32 6, %v3505_v9 }
 0xb55   :  { %v3742_v63 = vrot.slane %v3508_v11, %v1360_v61 }
 0xb59   :  { %v3307_v1 = vpop.eup %3306 }
 0xb5a   :  { %v1143_v2 = vmul.f32 %v3307_v1, %v1127_v33 }
 0xb5c   :  { %v1149_v8 = vmul.f32 %v3703_v0, %v1143_v2 }
 0xb5d   :  { %v3309_v10 = vpop.eup %3308 }
 0xb5e   :  { %v1144_v13 = vmul.f32 %v3309_v10, %v1128_v32  ;;  %v1155_v15 = vadd.f32 %v3706_v4, %v1149_v8 }
 0xb60   :  { %2886 = vmatprep.mubr.msk.f32.mxu1 %vm110_vm0, %v1155_v15  ;;  %v1150_v18 = vmul.f32 %v3703_v0, %v1144_v13  ;;  %v3745_v13 = vrot.slane %v3508_v11, %v1366_v62 }
 0xb62   :  { %v1156_v16 = vadd.f32 %v3706_v4, %v1150_v18 }
 0xb64   :  { %2887 = vmatmul.mubr.msk.f32.vlgmr.msra.gmra.mrb[10].mxu1 %vm110_vm0, %v1156_v16 }
 0xb65   :  { %3099 = vmatpush3.bf16.msra.mxu1 %v3489_v3 }
 0xb66   :  { %3101 = vmatprep.subr.bf16.mxu1 %v3493_v6 }
 0xb69   :  { %3103 = vmatpush3.bf16.msra.mxu1 %v3493_v6 }
 0xc37   :  { %v2888_v23 = vpop.f32.mrb[10].mxu1 }
 0xc38   :  { %v1239_v3 = vadd.f32 %v2888_v23, %v3723_v22  ;;  %v1233_v24 = vpop.f32.mrb[11].mxu1 }
 0xc39   :  { %v1234_v25 = vadd.f32 %v1233_v24, %v3723_v22 }
 0xc3a   :  { %v1243_v26 = vmax.f32 %v1239_v3, 0.0 }
 0xc3b   :  { %v1242_v6 = vmax.f32 %v1234_v25, 0.0 }
 0xc3d   :  { %2905 = vmatprep.mubr.msk.f32.mxu0 %vm1248_vm7, %v1242_v6 }
 0xc3e   :  { %2906 = vmatmul.mubr.msk.f32.vlgmr.msra.gmra.mrb[10].mxu0 %vm1248_vm7, %v1243_v26 }
 0xd11   :  { %v2907_v29 = vpop.f32.mrb[10].mxu0 }
 0xd12   :  { %v1327_v30 = vadd.f32 %v2907_v29, %v3731_v28  ;;  %v1321_v31 = vpop.f32.mrb[11].mxu0 }
 0xd13   :  { %v1322_v32 = vadd.f32 %v1321_v31, %v3731_v28 }
 0xd14   :  { %v1331_v33 = vadd.f32 %v1327_v30, %v1156_v16 }
 0xd15   :  { %v1330_v36 = vadd.f32 %v1322_v32, %v1155_v15 }
 0xd16   :  { %v1335_v37 = vsel %vm110_vm0, %v1331_v33, 0.0 }
 0xd17   :  { %1336 = vadd.xlane.f32.xlu0 %v1335_v37  ;;  %v1332_v38 = vsel %vm110_vm0, %v1330_v36, 0.0 }
 0xd18   :  { %1333 = vadd.xlane.f32.xlu1 %v1332_v38 }
 0xda4   :  { %v1337_v7 = vpop.xlane.xlu0 %1336 }
 0xda5   :  { %v1339_v5 = vmul.f32 0.03125, %v1337_v7  ;;  %v1334_v39 = vpop.xlane.xlu1 %1333 }
 0xda6   :  { %v1338_v41 = vmul.f32 0.03125, %v1334_v39 }
 0xda7   :  { %v1341_v42 = vsub.f32 %v1331_v33, %v1339_v5 }
 0xda8   :  { %v1340_v48 = vsub.f32 %v1330_v36, %v1338_v41 }
 0xda9   :  { %v1343_v49 = vmul.f32 %v1341_v42, %v1341_v42 }
 0xdaa   :  { %v1342_v50 = vmul.f32 %v1340_v48, %v1340_v48 }
 0xdab   :  { %v1347_v52 = vsel %vm110_vm0, %v1343_v49, 0.0 }
 0xdac   :  { %1348 = vadd.xlane.f32.xlu0 %v1347_v52  ;;  %v1344_v53 = vsel %vm110_vm0, %v1342_v50, 0.0 }
 0xdad   :  { %1345 = vadd.xlane.f32.xlu1 %v1344_v53 }
 0xe39   :  { %v1349_v45 = vpop.xlane.xlu0 %1348 }
 0xe3a   :  { %v1351_v55 = vmul.f32 0.03125, %v1349_v45  ;;  %v1346_v17 = vpop.xlane.xlu1 %1345 }
 0xe3b   :  { %v1350_v56 = vmul.f32 0.03125, %v1346_v17 }
 0xe3c   :  { %v1353_v57 = vadd.f32 1e-05, %v1351_v55 }
 0xe3d   :  { %v1352_v59 = vadd.f32 1e-05, %v1350_v56 }
 0xe3e   :  { %3310 = vrsqrt.f32 %v1353_v57 }
 0xe3f   :  { %3312 = vrsqrt.f32 %v1352_v59 }
 0xe48   :  { %v3311_v1 = vpop.eup %3310 }
 0xe49   :  { %v3313_v2 = vpop.eup %3312  ;;  %v1357_v8 = vmul.f32 %v3311_v1, %v1341_v42 }
 0xe4a   :  { %v1356_v10 = vmul.f32 %v3313_v2, %v1340_v48 }
 0xe4b   :  { %v1363_v15 = vmul.f32 %v3742_v63, %v1357_v8 }
 0xe4c   :  { %v1362_v18 = vmul.f32 %v3742_v63, %v1356_v10 }
 0xe4d   :  { %v3753_v19 = vadd.f32 %v3745_v13, %v1363_v15 }
 0xe4e   :  { %v3750_v16 = vadd.f32 %v3745_v13, %v1362_v18 }
 0xe50   :  { %2916 = vmatprep.mubr.msk.f32.mxu1 %vm110_vm0, %v3750_v16 }
 0xe51   :  { %2917 = vmatmul.mubr.msk.f32.vlgmr.msra.gmra.mrb[12].mxu1 %vm110_vm0, %v3753_v19 }
 0xf24   :  { %v2918_v9 = vpop.f32.mrb[12].mxu1 }
 0xf25   :  { %v3760_v11 = vadd.f32 %v2918_v9, %v3511_v12  ;;  %v1442_v14 = vpop.f32.mrb[13].mxu1 }
 0xf26   :  { %v3763_v43 = vadd.f32 %v1442_v14, %v3511_v12 }
 0xf28   :  { %2923 = vmatprep.mubr.msk.f32.mxu1 %vm198_vm1, %v3763_v43  ;;  %v3769_v23 = vpack.i.bf16 %v3760_v11, %v3763_v43 }
 0xf2a   :  { %3240 = vrot.lane.b32.xlu0 %v3769_v23, %s3432_s7  ;;  %3235 = vrot.lane.b32.xlu1 %v3769_v23, %s3431_s6 }
 0xf2e   :  { %1651 = vrot.lane.b32.xlu1 %v3763_v43, %s3430_s1 }
 0xf32   :  { %1653 = vrot.lane.b32.xlu1 %v3760_v11, %s3430_s1 }
 0xf9c   :  { %v3241_v12 = vpop.permute.xlu0 %3240  ;;  %v3236_v3 = vpop.permute.xlu1 %3235 }
 0xf9d   :  { %v3243_v24 = vunpack.i.h.bf16 %v3241_v12  ;;  %v3242_v25 = vunpack.i.l.bf16 %v3241_v12  ;;  %v3238_v6 = vunpack.i.h.bf16 %v3236_v3  ;;  %v3237_v26 = vunpack.i.l.bf16 %v3236_v3 }
 0xf9f   :  { %v3104_v27 = vpack.c.bf16 %v3238_v6, %v3237_v26  ;;  %v3114_v29 = vpack.c.bf16 %v3243_v24, %v3242_v25 }
 0xfa0   :  { %v1652_v30 = vpop.permute.xlu1 %1651 }
 0xfa1   :  { %3106 = vmatprep.subr.msk.bf16.mxu1 %vm3535_vm2, %v3104_v27 }
 0xfa2   :  { %3109 = vmatpush3.bf16.xpose.msk.msra.mxu1 %vm3535_vm2, %v3104_v27 }
 0xfa3   :  { %3116 = vmatprep.subr.msk.bf16.mxu1 %vm3535_vm2, %v3114_v29 }
 0xfa4   :  { %v1654_v31 = vpop.permute.xlu1 %1653 }
 0xfa9   :  { %2924 = vmatmul.mubr.msk.f32.vlgmr.msra.gmra.mrb[14].mxu1 %vm198_vm1, %v3760_v11 }
 0xfaa   :  { %3119 = vmatpush3.bf16.xpose.msk.msra.mxu1 %vm3535_vm2, %v3114_v29  ;;  %2937 = vmatprep.mubr.msk.f32.mxu1 %vm198_vm1, %v1652_v30 }
 0xfb1   :  { %2938 = vmatmul.mubr.msk.f32.vlgmr.msra.gmra.mrb[16].mxu1 %vm198_vm1, %v1654_v31 }
0x107c   :  { %v2925_v32 = vpop.f32.mrb[14].mxu1 }
0x107d   :  { %v1541_v33 = vsel %vm3553_vm3, %v2925_v32, -1e+30  ;;  %v1531_v36 = vpop.f32.mrb[15].mxu1 }
0x107e   :  { %v1540_v37 = vsel %vm3557_vm4, %v1531_v36, -1e+30  ;;  %v1545_v38 = vsel %vm284_vm5, %v1541_v33, -inf }
0x107f   :  { %1546 = vmax.xlane.f32.xlu1 %v1545_v38  ;;  %v1542_v7 = vsel %vm284_vm5, %v1540_v37, -inf }
0x1080   :  { %1543 = vmax.xlane.f32.xlu0 %v1542_v7 }
0x1084   :  { %v2939_v5 = vpop.f32.mrb[16].mxu1 }
0x1085   :  { %v1733_v39 = vpop.f32.mrb[17].mxu1  ;;  %v1743_v48 = vsel %vm3553_vm3, %v2939_v5, -1e+30 }
0x1086   :  { %v1742_v41 = vsel %vm3557_vm4, %v1733_v39, -1e+30  ;;  %v1747_v49 = vsel %vm284_vm5, %v1743_v48, -inf }
0x1087   :  { %v1744_v42 = vsel %vm284_vm5, %v1742_v41, -inf }
0x1088   :  { %1745 = vmax.xlane.f32.xlu0 %v1744_v42 }
0x108c   :  { %1748 = vmax.xlane.f32.xlu0 %v1747_v49 }
0x1090   :  { %3245 = vrot.lane.b32.xlu1 %v3769_v23, %s3433_s8 }
0x110c   :  { %v1547_v50 = vpop.xlane.xlu1 %1546 }
0x110d   :  { %v1549_v52 = vsub.f32 %v1541_v33, %v1547_v50  ;;  %v1544_v53 = vpop.xlane.xlu0 %1543 }
0x110e   :  { %v1548_v45 = vsub.f32 %v1540_v37, %v1544_v53 }
0x110f   :  { %v1552_v55 = vmul.f32 1.442695, %v1549_v52 }
0x1110   :  { %v1550_v17 = vmul.f32 1.442695, %v1548_v45  ;;  %v3246_v56 = vpop.permute.xlu1 %3245 }
0x1111   :  { %3314 = vpow2.f32 %v1552_v55  ;;  %v3248_v57 = vunpack.i.h.bf16 %v3246_v56  ;;  %v3247_v59 = vunpack.i.l.bf16 %v3246_v56 }
0x1112   :  { %3316 = vpow2.f32 %v1550_v17 }
0x1113   :  { %v3110_v61 = vpack.c.bf16 %v3248_v57, %v3247_v59 }
0x1115   :  { %3111 = vmatprep.subr.bf16.mxu0 %v3110_v61  ;;  %v1746_v62 = vpop.xlane.xlu0 %1745 }
0x1116   :  { %3113 = vmatpush3.bf16.msra.mxu0 %v3110_v61  ;;  %v1750_v3 = vsub.f32 %v1742_v41, %v1746_v62 }
0x1118   :  { %v1752_v24 = vmul.f32 1.442695, %v1750_v3 }
0x1119   :  { %v1749_v1 = vpop.xlane.xlu0 %1748 }
0x111a   :  { %v1751_v2 = vsub.f32 %v1743_v48, %v1749_v1 }
0x111b   :  { %v3315_v8 = vpop.eup %3314 }
0x111c   :  { %v3317_v10 = vpop.eup %3316  ;;  %v1754_v15 = vmul.f32 1.442695, %v1751_v2  ;;  %v1557_v18 = vsel %vm284_vm5, %v3315_v8, 0.0 }
0x111d   :  { %1558 = vadd.xlane.f32.xlu0 %v1557_v18  ;;  %v1554_v9 = vsel %vm284_vm5, %v3317_v10, 0.0 }
0x111e   :  { %3318 = vpow2.f32 %v1754_v15  ;;  %1555 = vadd.xlane.f32.xlu1 %v1554_v9 }
0x111f   :  { %3320 = vpow2.f32 %v1752_v24 }
0x1128   :  { %v3319_v14 = vpop.eup %3318 }
0x1129   :  { %v1759_v12 = vsel %vm284_vm5, %v3319_v14, 0.0  ;;  %v3321_v25 = vpop.eup %3320 }
0x112a   :  { %1760 = vadd.xlane.f32.xlu0 %v1759_v12  ;;  %v1756_v6 = vsel %vm284_vm5, %v3321_v25, 0.0 }
0x112f   :  { %3255 = vrot.lane.b32.xlu1 %v3769_v23, %s3434_s9 }
0x1140   :  { %3250 = vrot.lane.b32.xlu0 %v3769_v23, %s3435_s10 }
0x1144   :  { %1855 = vrot.lane.b32.xlu0 %v3760_v11, %s3436_s11 }
0x1153   :  { %1757 = vadd.xlane.f32.xlu1 %v1756_v6 }
0x1164   :  { %1853 = vrot.lane.b32.xlu1 %v3763_v43, %s3436_s11 }
0x11aa   :  { %v1559_v26 = vpop.xlane.xlu0 %1558 }
0x11ab   :  { %3322 = vrcp.f32 %v1559_v26  ;;  %v1556_v27 = vpop.xlane.xlu1 %1555 }
0x11ac   :  { %3324 = vrcp.f32 %v1556_v27 }
0x11af   :  { %v3256_v36 = vpop.permute.xlu1 %3255 }
0x11b0   :  { %v3258_v38 = vunpack.i.h.bf16 %v3256_v36  ;;  %v3257_v7 = vunpack.i.l.bf16 %v3256_v36 }
0x11b2   :  { %v3124_v42 = vpack.c.bf16 %v3258_v38, %v3257_v7 }
0x11b5   :  { %v3323_v29 = vpop.eup %3322 }
0x11b6   :  { %v3325_v30 = vpop.eup %3324  ;;  %v1563_v33 = vmul.f32 %v3323_v29, %v3315_v8 }
0x11b7   :  { %v1761_v31 = vpop.xlane.xlu0 %1760  ;;  %v1562_v32 = vmul.f32 %v3325_v30, %v3317_v10 }
0x11b8   :  { %3326 = vrcp.f32 %v1761_v31 }
0x11b9   :  { %2930 = vmatprep.mubr.msk.f32.mxu0 %vm284_vm5, %v1562_v32 }
0x11ba   :  { %2931 = vmatmul.mubr.msk.f32.vlgmr.msra.gmra.mrb[12].mxu0 %vm284_vm5, %v1563_v33 }
0x11bb   :  { %v3251_v37 = vpop.permute.xlu0 %3250 }
0x11bc   :  { %v3253_v5 = vunpack.i.h.bf16 %v3251_v37  ;;  %v3252_v39 = vunpack.i.l.bf16 %v3251_v37 }
0x11be   :  { %v3120_v41 = vpack.c.bf16 %v3253_v5, %v3252_v39 }
0x11bf   :  { %v1856_v55 = vpop.permute.xlu0 %1855 }
0x11c0   :  { %3121 = vmatprep.subr.bf16.mxu0 %v3120_v41 }
0x11c1   :  { %3123 = vmatpush3.bf16.msra.mxu0 %v3120_v41 }
0x11c2   :  { %3126 = vmatprep.subr.msk.bf16.mxu0 %vm3535_vm2, %v3124_v42  ;;  %v3327_v49 = vpop.eup %3326 }
0x11c3   :  { %v1765_v53 = vmul.f32 %v3327_v49, %v3319_v14 }
0x11e0   :  { %v1758_v48 = vpop.xlane.xlu1 %1757 }
0x11e1   :  { %3328 = vrcp.f32 %v1758_v48 }
0x11e4   :  { %v1854_v45 = vpop.permute.xlu1 %1853 }
0x11eb   :  { %v3329_v50 = vpop.eup %3328 }
0x11ec   :  { %v1764_v52 = vmul.f32 %v3329_v50, %v3321_v25 }
0x11ee   :  { %2944 = vmatprep.mubr.msk.f32.mxu0 %vm284_vm5, %v1764_v52 }
0x11ef   :  { %2945 = vmatmul.mubr.msk.f32.vlgmr.msra.gmra.mrb[14].mxu0 %vm284_vm5, %v1765_v53 }
0x11f0   :  { %3129 = vmatpush3.bf16.xpose.msk.msra.mxu0 %vm3535_vm2, %v3124_v42  ;;  %2951 = vmatprep.mubr.msk.f32.mxu0 %vm198_vm1, %v1854_v45 }
0x11f7   :  { %2952 = vmatmul.mubr.msk.f32.vlgmr.msra.gmra.mrb[16].mxu0 %vm198_vm1, %v1856_v55 }
0x128d   :  { %v3827_v17 = vpop.f32.mrb[12].mxu0 }
0x128e   :  { %v3829_v56 = vpop.f32.mrb[13].mxu0 }
0x12c2   :  { %v3831_v57 = vpop.f32.mrb[14].mxu0 }
0x12c3   :  { %v3833_v59 = vpop.f32.mrb[15].mxu0 }
0x12ca   :  { %v2953_v61 = vpop.f32.mrb[16].mxu0 }
0x12cb   :  { %v1945_v62 = vsel %vm3553_vm3, %v2953_v61, -1e+30  ;;  %v1935_v1 = vpop.f32.mrb[17].mxu0 }
0x12cc   :  { %v1944_v2 = vsel %vm3557_vm4, %v1935_v1, -1e+30  ;;  %v1949_v8 = vsel %vm284_vm5, %v1945_v62, -inf }
0x12cd   :  { %1950 = vmax.xlane.f32.xlu0 %v1949_v8  ;;  %v1946_v10 = vsel %vm284_vm5, %v1944_v2, -inf }
0x12ce   :  { %1947 = vmax.xlane.f32.xlu1 %v1946_v10 }
0x135a   :  { %v1951_v15 = vpop.xlane.xlu0 %1950 }
0x135b   :  { %v1953_v18 = vsub.f32 %v1945_v62, %v1951_v15  ;;  %v1948_v9 = vpop.xlane.xlu1 %1947 }
0x135c   :  { %v1952_v14 = vsub.f32 %v1944_v2, %v1948_v9 }
0x135d   :  { %v1956_v12 = vmul.f32 1.442695, %v1953_v18 }
0x135e   :  { %v1954_v3 = vmul.f32 1.442695, %v1952_v14 }
0x135f   :  { %3330 = vpow2.f32 %v1956_v12 }
0x1360   :  { %3332 = vpow2.f32 %v1954_v3 }
0x1369   :  { %v3331_v24 = vpop.eup %3330 }
0x136a   :  { %v3333_v25 = vpop.eup %3332  ;;  %v1961_v6 = vsel %vm284_vm5, %v3331_v24, 0.0 }
0x136b   :  { %1962 = vadd.xlane.f32.xlu1 %v1961_v6  ;;  %v1958_v26 = vsel %vm284_vm5, %v3333_v25, 0.0 }
0x136c   :  { %1959 = vadd.xlane.f32.xlu0 %v1958_v26 }
0x137c   :  { %3265 = vrot.lane.b32.xlu1 %v3769_v23, %s3437_s12 }
0x1380   :  { %2055 = vrot.lane.b32.xlu1 %v3763_v43, %s3438_s13 }
0x1382   :  { %3260 = vrot.lane.b32.xlu0 %v3769_v23, %s3439_s14 }
0x1386   :  { %2057 = vrot.lane.b32.xlu0 %v3760_v11, %s3438_s13 }
0x13f8   :  { %v1963_v27 = vpop.xlane.xlu1 %1962 }
0x13f9   :  { %3334 = vrcp.f32 %v1963_v27  ;;  %v1960_v29 = vpop.xlane.xlu0 %1959 }
0x13fa   :  { %3336 = vrcp.f32 %v1960_v29 }
0x13fc   :  { %v3266_v30 = vpop.permute.xlu1 %3265 }
0x13fd   :  { %v3261_v31 = vpop.permute.xlu0 %3260  ;;  %v3268_v32 = vunpack.i.h.bf16 %v3266_v30  ;;  %v3267_v33 = vunpack.i.l.bf16 %v3266_v30 }
0x13fe   :  { %v3263_v36 = vunpack.i.h.bf16 %v3261_v31  ;;  %v3262_v37 = vunpack.i.l.bf16 %v3261_v31 }
0x13ff   :  { %v3134_v7 = vpack.c.bf16 %v3268_v32, %v3267_v33 }
0x1400   :  { %v3130_v38 = vpack.c.bf16 %v3263_v36, %v3262_v37  ;;  %v2056_v41 = vpop.permute.xlu1 %2055 }
0x1401   :  { %v2058_v42 = vpop.permute.xlu0 %2057 }
0x1402   :  { %3131 = vmatprep.subr.bf16.mxu1 %v3130_v38 }
0x1403   :  { %v3335_v43 = vpop.eup %3334  ;;  %3133 = vmatpush3.bf16.msra.mxu1 %v3130_v38 }
0x1404   :  { %v3337_v5 = vpop.eup %3336  ;;  %3136 = vmatprep.subr.msk.bf16.mxu1 %vm3535_vm2, %v3134_v7  ;;  %v1967_v39 = vmul.f32 %v3335_v43, %v3331_v24 }
0x1405   :  { %v1966_v11 = vmul.f32 %v3337_v5, %v3333_v25 }
0x1407   :  { %2958 = vmatprep.mubr.msk.f32.mxu1 %vm284_vm5, %v1966_v11 }
0x1408   :  { %2959 = vmatmul.mubr.msk.f32.vlgmr.msra.gmra.mrb[18].mxu1 %vm284_vm5, %v1967_v39 }
0x1409   :  { %2965 = vmatprep.mubr.msk.f32.mxu1 %vm198_vm1, %v2056_v41 }
0x140c   :  { %3139 = vmatpush3.bf16.xpose.msk.msra.mxu1 %vm3535_vm2, %v3134_v7 }
0x140d   :  { %3153 = vmatprep.subr.bf16.mxu1 %v3679_v40 }
0x1413   :  { %2966 = vmatmul.mubr.msk.f32.vlgmr.msra.gmra.mrb[20].mxu1 %vm198_vm1, %v2058_v42 }
0x1414   :  { %3155 = vmatpush3.bf16.msra.mxu1 %v3679_v40 }
0x1415   :  { %3157 = vmatprep.subr.bf16.mxu1 %v3683_v47 }
0x1418   :  { %3159 = vmatpush3.bf16.msra.mxu1 %v3683_v47 }
0x14db   :  { %v2960_v48 = vpop.f32.mrb[18].mxu1 }
0x14dc   :  { %v2046_v49 = vpop.f32.mrb[19].mxu1 }
0x14e6   :  { %v2967_v50 = vpop.f32.mrb[20].mxu1 }
0x14e7   :  { %v2147_v52 = vsel %vm3553_vm3, %v2967_v50, -1e+30  ;;  %v2137_v53 = vpop.f32.mrb[21].mxu1 }
0x14e8   :  { %v2146_v21 = vsel %vm3557_vm4, %v2137_v53, -1e+30  ;;  %v2151_v45 = vsel %vm284_vm5, %v2147_v52, -inf }
0x14e9   :  { %2152 = vmax.xlane.f32.xlu0 %v2151_v45  ;;  %v2148_v55 = vsel %vm284_vm5, %v2146_v21, -inf }
0x14ea   :  { %2149 = vmax.xlane.f32.xlu1 %v2148_v55 }
0x1576   :  { %v2153_v40 = vpop.xlane.xlu0 %2152 }
0x1577   :  { %v2155_v61 = vsub.f32 %v2147_v52, %v2153_v40  ;;  %v2150_v62 = vpop.xlane.xlu1 %2149 }
0x1578   :  { %v2154_v47 = vsub.f32 %v2146_v21, %v2150_v62 }
0x1579   :  { %v2158_v1 = vmul.f32 1.442695, %v2155_v61 }
0x157a   :  { %v2156_v2 = vmul.f32 1.442695, %v2154_v47 }
0x157b   :  { %3338 = vpow2.f32 %v2158_v1 }
0x157c   :  { %3340 = vpow2.f32 %v2156_v2 }
0x1585   :  { %v3339_v34 = vpop.eup %3338 }
0x1586   :  { %v3341_v8 = vpop.eup %3340  ;;  %v2163_v10 = vsel %vm284_vm5, %v3339_v34, 0.0 }
0x1587   :  { %2164 = vadd.xlane.f32.xlu1 %v2163_v10  ;;  %v2160_v35 = vsel %vm284_vm5, %v3341_v8, 0.0 }
0x1588   :  { %2161 = vadd.xlane.f32.xlu0 %v2160_v35 }
0x1598   :  { %2259 = vrot.lane.b32.xlu1 %v3833_v59, %s3428_s20 }
0x159c   :  { %2261 = vrot.lane.b32.xlu1 %v3831_v57, %s3428_s20 }
0x159e   :  { %3270 = vrot.lane.b32.xlu0 %v3769_v23, %s3440_s15 }
0x15a0   :  { %2269 = vrot.lane.b32.xlu1 %v2960_v48, %s3441_s16 }
0x15a2   :  { %2267 = vrot.lane.b32.xlu0 %v2046_v49, %s3441_s16 }
0x1614   :  { %v2165_v15 = vpop.xlane.xlu1 %2164 }
0x1615   :  { %3342 = vrcp.f32 %v2165_v15  ;;  %v2162_v18 = vpop.xlane.xlu0 %2161 }
0x1616   :  { %3344 = vrcp.f32 %v2162_v18 }
0x1618   :  { %v2260_v26 = vpop.permute.xlu1 %2259 }
0x1619   :  { %v3271_v9 = vpop.permute.xlu0 %3270  ;;  %v2281_v31 = vsel %vm198_vm1, %v3829_v56, %v2260_v26 }
0x161a   :  { %v3273_v14 = vunpack.i.h.bf16 %v3271_v9  ;;  %v3272_v12 = vunpack.i.l.bf16 %v3271_v9 }
0x161c   :  { %v3140_v3 = vpack.c.bf16 %v3273_v14, %v3272_v12  ;;  %v2262_v27 = vpop.permute.xlu1 %2261 }
0x161d   :  { %v2268_v30 = vpop.permute.xlu0 %2267  ;;  %v2282_v32 = vsel %vm198_vm1, %v3827_v17, %v2262_v27 }
0x161e   :  { %3141 = vmatprep.subr.bf16.mxu0 %v3140_v3 }
0x161f   :  { %v3343_v59 = vpop.eup %3342  ;;  %3143 = vmatpush3.bf16.msra.mxu0 %v3140_v3 }
0x1620   :  { %v3345_v24 = vpop.eup %3344  ;;  %3145 = vmatprep.subr.bf16.mxu0 %v3647_v58  ;;  %v2169_v23 = vmul.f32 %v3343_v59, %v3339_v34  ;;  %v2270_v29 = vpop.permute.xlu1 %2269 }
0x1621   :  { %v2168_v57 = vmul.f32 %v3345_v24, %v3341_v8  ;;  %v2284_v36 = vsel %vm284_vm5, %v2282_v32, %v2270_v29 }
0x1623   :  { %2972 = vmatprep.mubr.msk.f32.mxu0 %vm284_vm5, %v2168_v57 }
0x1624   :  { %2973 = vmatmul.mubr.msk.f32.vlgmr.msra.gmra.mrb[18].mxu0 %vm284_vm5, %v2169_v23 }
0x1625   :  { %3147 = vmatpush3.bf16.msra.mxu0 %v3647_v58 }
0x1626   :  { %3149 = vmatprep.subr.bf16.mxu0 %v3649_v60 }
0x1629   :  { %3151 = vmatpush3.bf16.msra.mxu0 %v3649_v60  ;;  %v2283_v60 = vsel %vm284_vm5, %v2281_v31, %v2268_v30 }
0x162a   :  { %3161 = vmatprep.subr.bf16.mxu0 %v3688_v51 }
0x16f7   :  { %v2974_v25 = vpop.f32.mrb[18].mxu0 }
0x16f8   :  { %2277 = vrot.lane.b32.xlu1 %v2974_v25, %s3442_s17  ;;  %v2248_v6 = vpop.f32.mrb[19].mxu0 }
0x16f9   :  { %2275 = vrot.lane.b32.xlu0 %v2248_v6, %s3442_s17 }
0x176a   :  { %v2278_v58 = vpop.permute.xlu1 %2277 }
0x176b   :  { %v2276_v33 = vpop.permute.xlu0 %2275  ;;  %v2286_v38 = vsel %vm1028_vm6, %v2284_v36, %v2278_v58 }
0x176c   :  { %v2285_v37 = vsel %vm1028_vm6, %v2283_v60, %v2276_v33 }
0x176d   :  { %2983 = vmatprep.mubr.msk.f32.mxu0 %vm110_vm0, %v2285_v37 }
0x176e   :  { %2984 = vmatmul.mubr.msk.f32.vlgmr.msra.gmra.mrb[20].mxu0 %vm110_vm0, %v2286_v38 }
0x176f   :  { %3163 = vmatpush3.bf16.msra.mxu0 %v3688_v51 }
0x1770   :  { %3165 = vmatprep.subr.bf16.mxu0 %v3690_v46 }
0x1773   :  { %3167 = vmatpush3.bf16.msra.mxu0 %v3690_v46 }
0x1774   :  { %3169 = vmatprep.subr.bf16.mxu0 %v3695_v54 }
0x1777   :  { %3171 = vmatpush3.bf16.msra.mxu0 %v3695_v54 }
0x1778   :  { %3173 = vmatprep.subr.bf16.mxu0 %v3717_v20 }
0x177b   :  { %3175 = vmatpush3.bf16.msra.mxu0 %v3717_v20 }
0x1841   :  { %v2985_v17 = vpop.f32.mrb[20].mxu0 }
0x1842   :  { %v2365_v56 = vadd.f32 %v2985_v17, %v3669_v44  ;;  %v2359_v7 = vpop.f32.mrb[21].mxu0 }
0x1843   :  { %v2360_v43 = vadd.f32 %v2359_v7, %v3669_v44 }
0x1844   :  { %v2369_v51 = vadd.f32 %v2365_v56, %v3753_v19 }
0x1845   :  { %v2368_v5 = vadd.f32 %v2360_v43, %v3750_v16 }
0x1846   :  { %v2373_v46 = vsel %vm110_vm0, %v2369_v51, 0.0 }
0x1847   :  { %2374 = vadd.xlane.f32.xlu1 %v2373_v46  ;;  %v2370_v11 = vsel %vm110_vm0, %v2368_v5, 0.0 }
0x1848   :  { %2371 = vadd.xlane.f32.xlu0 %v2370_v11 }
0x18d4   :  { %v2375_v54 = vpop.xlane.xlu1 %2374 }
0x18d5   :  { %v2377_v39 = vmul.f32 0.03125, %v2375_v54  ;;  %v2372_v41 = vpop.xlane.xlu0 %2371 }
0x18d6   :  { %v2376_v20 = vmul.f32 0.03125, %v2372_v41 }
0x18d7   :  { %v2379_v42 = vsub.f32 %v2369_v51, %v2377_v39 }
0x18d8   :  { %v2378_v48 = vsub.f32 %v2368_v5, %v2376_v20 }
0x18d9   :  { %v2381_v44 = vmul.f32 %v2379_v42, %v2379_v42 }
0x18da   :  { %v2380_v49 = vmul.f32 %v2378_v48, %v2378_v48 }
0x18db   :  { %v2385_v19 = vsel %vm110_vm0, %v2381_v44, 0.0 }
0x18dc   :  { %v2382_v50 = vsel %vm110_vm0, %v2380_v49, 0.0 }
0x18dd   :  { %2383 = vadd.xlane.f32.xlu0 %v2382_v50 }
0x18e1   :  { %2386 = vadd.xlane.f32.xlu0 %v2385_v19 }
0x196a   :  { %v2384_v16 = vpop.xlane.xlu0 %2383 }
0x196b   :  { %v2388_v52 = vmul.f32 0.03125, %v2384_v16 }
0x196d   :  { %v2390_v53 = vadd.f32 1e-05, %v2388_v52 }
0x196e   :  { %v2387_v21 = vpop.xlane.xlu0 %2386 }
0x196f   :  { %3346 = vrsqrt.f32 %v2390_v53  ;;  %v2389_v45 = vmul.f32 0.03125, %v2387_v21 }
0x1971   :  { %v2391_v55 = vadd.f32 1e-05, %v2389_v45 }
0x1973   :  { %3348 = vrsqrt.f32 %v2391_v55 }
0x1979   :  { %v3347_v40 = vpop.eup %3346 }
0x197a   :  { %v2394_v61 = vmul.f32 %v3347_v40, %v2378_v48 }
0x197c   :  { %v2396_v62 = vmul.f32 %v2394_v61, %v3703_v0 }
0x197d   :  { %v3349_v47 = vpop.eup %3348 }
0x197e   :  { %v2395_v1 = vmul.f32 %v3349_v47, %v2379_v42  ;;  %v2398_v2 = vadd.f32 %v2396_v62, %v3706_v4 }
0x1980   :  { %2994 = vmatprep.mubr.msk.f32.mxu1 %vm110_vm0, %v2398_v2  ;;  %v2397_v34 = vmul.f32 %v2395_v1, %v3703_v0 }
0x1982   :  { %v2399_v8 = vadd.f32 %v2397_v34, %v3706_v4 }
0x1984   :  { %2995 = vmatmul.mubr.msk.f32.vlgmr.msra.gmra.mrb[22].mxu1 %vm110_vm0, %v2399_v8 }
0x1a57   :  { %v2996_v10 = vpop.f32.mrb[22].mxu1 }
0x1a58   :  { %v2478_v35 = vadd.f32 %v2996_v10, %v3723_v22  ;;  %v2472_v15 = vpop.f32.mrb[23].mxu1 }
0x1a59   :  { %v2473_v18 = vadd.f32 %v2472_v15, %v3723_v22 }
0x1a5a   :  { %v2482_v14 = vmax.f32 %v2478_v35, 0.0 }
0x1a5b   :  { %v2481_v9 = vmax.f32 %v2473_v18, 0.0 }
0x1a5d   :  { %3013 = vmatprep.mubr.msk.f32.mxu0 %vm1248_vm7, %v2481_v9 }
0x1a5e   :  { %3014 = vmatmul.mubr.msk.f32.vlgmr.msra.gmra.mrb[22].mxu0 %vm1248_vm7, %v2482_v14 }
0x1b31   :  { %v3015_v12 = vpop.f32.mrb[22].mxu0 }
0x1b32   :  { %v2561_v3 = vadd.f32 %v3015_v12, %v3731_v28  ;;  %v2555_v0 = vpop.f32.mrb[23].mxu0 }
0x1b33   :  { %v2556_v4 = vadd.f32 %v2555_v0, %v3731_v28 }
0x1b34   :  { %v2565_v59 = vadd.f32 %v2561_v3, %v2399_v8 }
0x1b35   :  { %v2564_v24 = vadd.f32 %v2556_v4, %v2398_v2 }
0x1b36   :  { %v2569_v57 = vsel %vm110_vm0, %v2565_v59, 0.0 }
0x1b37   :  { %2570 = vadd.xlane.f32.xlu0 %v2569_v57  ;;  %v2566_v23 = vsel %vm110_vm0, %v2564_v24, 0.0 }
0x1b38   :  { %2567 = vadd.xlane.f32.xlu1 %v2566_v23 }
0x1bc4   :  { %v2571_v22 = vpop.xlane.xlu0 %2570 }
0x1bc5   :  { %v2573_v25 = vmul.f32 0.03125, %v2571_v22  ;;  %v2568_v6 = vpop.xlane.xlu1 %2567 }
0x1bc6   :  { %v2572_v26 = vmul.f32 0.03125, %v2568_v6 }
0x1bc7   :  { %v2575_v27 = vsub.f32 %v2565_v59, %v2573_v25 }
0x1bc8   :  { %v2574_v29 = vsub.f32 %v2564_v24, %v2572_v26 }
0x1bc9   :  { %v2577_v30 = vmul.f32 %v2575_v27, %v2575_v27 }
0x1bca   :  { %v2576_v31 = vmul.f32 %v2574_v29, %v2574_v29 }
0x1bcb   :  { %v2581_v58 = vsel %vm110_vm0, %v2577_v30, 0.0 }
0x1bcc   :  { %2582 = vadd.xlane.f32.xlu0 %v2581_v58  ;;  %v2578_v28 = vsel %vm110_vm0, %v2576_v31, 0.0 }
0x1bcd   :  { %2579 = vadd.xlane.f32.xlu1 %v2578_v28 }
0x1c59   :  { %v2583_v32 = vpop.xlane.xlu0 %2582 }
0x1c5a   :  { %v2585_v60 = vmul.f32 0.03125, %v2583_v32  ;;  %v2580_v33 = vpop.xlane.xlu1 %2579 }
0x1c5b   :  { %v2584_v36 = vmul.f32 0.03125, %v2580_v33 }
0x1c5c   :  { %v2587_v37 = vadd.f32 1e-05, %v2585_v60 }
0x1c5d   :  { %v2586_v38 = vadd.f32 1e-05, %v2584_v36 }
0x1c5e   :  { %3350 = vrsqrt.f32 %v2587_v37 }
0x1c5f   :  { %3352 = vrsqrt.f32 %v2586_v38 }
0x1c68   :  { %v3351_v17 = vpop.eup %3350 }
0x1c69   :  { %v3353_v56 = vpop.eup %3352  ;;  %v2591_v7 = vmul.f32 %v3351_v17, %v2575_v27 }
0x1c6a   :  { %v2590_v43 = vmul.f32 %v3353_v56, %v2574_v29 }
0x1c6b   :  { %v2593_v51 = vmul.f32 %v2591_v7, %v3742_v63 }
0x1c6c   :  { %v2592_v5 = vmul.f32 %v2590_v43, %v3742_v63 }
0x1c6d   :  { %v2595_v46 = vadd.f32 %v2593_v51, %v3745_v13 }
0x1c6e   :  { %v2594_v11 = vadd.f32 %v2592_v5, %v3745_v13 }
0x1c6f   :  { %2597 = vst.msk [vmem:[#allocation7 + $0x8] sm:$0xff] %vm110_vm0, %v2595_v46 }
0x1c70   :  { %2596 = vst.msk [vmem:[#allocation7] sm:$0xff] %vm110_vm0, %v2594_v11 }
0x1c71   :  { %3409 = shalt.err (!%p3406_p6)
}
0x1c72   :  { %s3410_s25 = scalar_lea.hbm %s3952_s2, 256 }
0x1c73   :  { %p3411_p7 = scmp.ne.s32.totalorder %s3952_s2, %s3410_s25  ;;  %p3414_p8 = scmp.lt.u32.totalorder %s3410_s25, %s3952_s2 }
0x1c75   :  { %p3416_p9 = pnand %p3414_p8, %p3411_p7 }
0x1c77   :  { %3419 = shalt.err (!%p3416_p9)
}
0x1c78   :  { %2609 = dma.vmem_to_hbm [thread:$0]  %s2604_s21, 256, %s3952_s2, [#allocation4], %s3427_s19, %s3427_s19, %s3428_s20  }
0x1c79   :  { %3424 = dma.done.wait [#allocation4], 256  }
0x1c7a   :  { %3425 = vsyncadd [#allocation4], 4294967040 }
0x1c7b   :  { %2613 = vsyncpa [#allocation3], 1 }
0x1c7c   :  { %2614 = vsyncpa [#allocation6], 1 }
0x1c7d   :  { %2615 = vsyncpa [#allocation4], 1 }

</bundles_post_ra>
